<compile_context>
chip_gen: v5e
topology: v5e:2x2
jax: 0.10.0
libtpu: 0.0.40
codegen_flags: <defaults>
</compile_context>

<pallas_src>
import math

import numpy as np
import jax
import jax.numpy as jnp
from jax.experimental import pallas as pl
from jax.experimental.pallas import tpu as pltpu

# Small, TPU-friendly instance of the module's hyper-parameters (the original
# file's 16/16/16 config has head_dim=1; we keep a small representative
# config with the same forward structure).
N_HIDDENS = 32           # n_hiddens (divisible by 2 and by N_HEADS)
N_HEADS = 4              # n_heads
N_LAYERS = 2             # n_layers
FFN_DIM = N_HIDDENS      # TransformerEncoderLayer(n_hiddens, n_heads, n_hiddens, ...)
CONTEXT_SIZE = 128
LN_EPS = 1e-5

_VMEM = pltpu.MemorySpace.VMEM

# ------------- packed-parameter layout (shared by prep code and kernel) ------
# Bias slab: one row per bias / LayerNorm vector, width 3*H (zero padded).
BIAS_EMB = 0
_B_QKV, _B_OUT, _B_LIN1, _B_LIN2, _B_LN1G, _B_LN1B, _B_LN2G, _B_LN2B = range(8)


def _bias_layer_row(l):
    return 1 + 8 * l


BIAS_CONV = 1 + 8 * N_LAYERS
BIAS_ADDATTN = BIAS_CONV + 1
BIAS_DEC = BIAS_CONV + 2
N_BIAS_ROWS = BIAS_DEC + 1

# w32 slab: all (H, H) matrices stacked along rows.
def _w32_block(l, j):            # j: 0=out_proj, 1=lin1, 2=lin2
    return 3 * l + j


W32_CONV0 = 3 * N_LAYERS         # conv taps 0, 1, 2
W32_ADDATTN = W32_CONV0 + 3
W32_DEC = W32_ADDATTN + 1
N_W32_BLOCKS = W32_DEC + 1


def _layernorm(x, gamma, beta):
    mu = jnp.mean(x, axis=-1, keepdims=True)
    var = jnp.mean((x - mu) ** 2, axis=-1, keepdims=True)
    return (x - mu) * jax.lax.rsqrt(var + LN_EPS) * gamma + beta


# ------------------------------------------------------------------- kernel --

def fused_forward_kernel(x_in_ref, pos_ref, emb_w_ref, qkvw_ref, w32_ref,
                         bias_ref, out_ref):
    """Whole TransformerModel forward in one kernel (eval mode)."""
    f32 = jnp.float32
    H = N_HIDDENS
    nh = N_HEADS
    hd = H // nh
    BS = x_in_ref.shape[0]
    B = out_ref.shape[0]
    S = BS // B

    def bias_row(r, w=H):
        return bias_ref[r:r + 1, 0:w]                              # (1, w)

    def w32(blk):
        return w32_ref[blk * H:(blk + 1) * H, :]                   # (H, H)

    # ---- embeddings (block-diagonal fused sym+add matmul) + positional ----
    x = (jnp.dot(x_in_ref[...], emb_w_ref[...], preferred_element_type=f32)
         + bias_row(BIAS_EMB))                                     # (BS, H)
    x = (x.reshape(B, S, H) + pos_ref[...]).reshape(BS, H)

    # ---- transformer encoder layers (post-LN, ReLU FFN) ----
    for l in range(N_LAYERS):
        r = _bias_layer_row(l)
        wqkv = qkvw_ref[l * H:(l + 1) * H, :]                      # (H, 3H)
        qkv = (jnp.dot(x, wqkv, preferred_element_type=f32)
               + bias_ref[r + _B_QKV:r + _B_QKV + 1, :])           # (BS, 3H)
        qkv3 = qkv.reshape(B, S, 3 * H)
        ctx_heads = []
        for h in range(nh):                                        # batched over B
            q = qkv3[:, :, h * hd:(h + 1) * hd]                    # scale pre-folded
            k = qkv3[:, :, H + h * hd:H + (h + 1) * hd]
            v = qkv3[:, :, 2 * H + h * hd:2 * H + (h + 1) * hd]
            s = jnp.einsum('bqd,bkd->bqk', q, k, preferred_element_type=f32)
            s = s - jnp.max(s, axis=-1, keepdims=True)
            p = jnp.exp(s)
            p = p * pl.reciprocal(jnp.sum(p, axis=-1, keepdims=True), approx=True)
            ctx_heads.append(
                jnp.einsum('bqk,bkd->bqd', p, v, preferred_element_type=f32))
        ctx = jnp.concatenate(ctx_heads, axis=-1).reshape(BS, H)    # (BS, H)
        attn = (jnp.dot(ctx, w32(_w32_block(l, 0)), preferred_element_type=f32)
                + bias_row(r + _B_OUT))
        y = _layernorm(x + attn, bias_row(r + _B_LN1G), bias_row(r + _B_LN1B))
        hmid = jnp.maximum(
            jnp.dot(y, w32(_w32_block(l, 1)), preferred_element_type=f32)
            + bias_row(r + _B_LIN1), 0.0)
        ff = (jnp.dot(hmid, w32(_w32_block(l, 2)), preferred_element_type=f32)
              + bias_row(r + _B_LIN2))
        x = _layernorm(y + ff, bias_row(r + _B_LN2G), bias_row(r + _B_LN2B))

    # ---- Conv1d(k=3, pad=1): whole-array shifts + batch-boundary mask ----
    sidx = jax.lax.broadcasted_iota(jnp.int32, (BS, 1), 0) % S
    zrow = jnp.zeros((1, H), f32)
    x_prev = jnp.where(sidx == 0, 0.0,
                       jnp.concatenate([zrow, x[:BS - 1]], axis=0))
    x_next = jnp.where(sidx == S - 1, 0.0,
                       jnp.concatenate([x[1:], zrow], axis=0))
    conv = (jnp.dot(x_prev, w32(W32_CONV0), preferred_element_type=f32)
            + jnp.dot(x, w32(W32_CONV0 + 1), preferred_element_type=f32)
            + jnp.dot(x_next, w32(W32_CONV0 + 2), preferred_element_type=f32)
            + bias_row(BIAS_CONV))                                  # (BS, H)

    # ---- additive-attention pooling (batched) + residual[-1] + decoder ----
    scores = (jnp.dot(conv, w32(W32_ADDATTN), preferred_element_type=f32)
              + bias_row(BIAS_ADDATTN))
    sc3 = scores.reshape(B, S, H)
    sc3 = sc3 - jnp.max(sc3, axis=1, keepdims=True)                 # softmax over seq
    p3 = jnp.exp(sc3)
    p3 = p3 * pl.reciprocal(jnp.sum(p3, axis=1, keepdims=True), approx=True)
    pooled = jnp.sum(p3 * conv.reshape(B, S, H), axis=1, keepdims=True)  # (B,1,H)
    pooled = (pooled + x.reshape(B, S, H)[:, S - 1:S, :]).reshape(B, H)
    dec = jnp.dot(pooled, w32(W32_DEC), preferred_element_type=f32)      # (B, H)
    out_ref[...] = 100.0 * (dec[:, 0:2] + bias_ref[BIAS_DEC:BIAS_DEC + 1, 0:2])


# --------------------------------------------------------------- parameters --

def init_params(key):
    H, nl, ff = N_HIDDENS, N_LAYERS, FFN_DIM
    Hh = H // 2

    def nrm(k, shape, scale=0.1):
        return (scale * jax.random.normal(k, shape)).astype(jnp.float32)

    ks = iter(jax.random.split(key, 128))
    p = {
        "emb_sym_w": nrm(next(ks), (Hh, 2)),  "emb_sym_b": nrm(next(ks), (Hh,)),
        "emb_add_w": nrm(next(ks), (Hh, 3)),  "emb_add_b": nrm(next(ks), (Hh,)),
        "pos_table": nrm(next(ks), (1000, H)),
        "conv_w": nrm(next(ks), (H, H, 3)),   "conv_b": nrm(next(ks), (H,)),
        "addattn_w": nrm(next(ks), (H, H)),   "addattn_b": nrm(next(ks), (H,)),
        "dec_w": nrm(next(ks), (2, H)),       "dec_b": nrm(next(ks), (2,)),
        "abcd_w1": nrm(next(ks), (64, 1)),    "abcd_b1": nrm(next(ks), (64,)),
        "abcd_w2": nrm(next(ks), (64, 64)),   "abcd_b2": nrm(next(ks), (64,)),
        "abcd_w3": nrm(next(ks), (4, 64)),    "abcd_b3": nrm(next(ks), (4,)),
        "layers": [],
    }
    for _ in range(nl):
        p["layers"].append({
            "in_proj_w": nrm(next(ks), (3 * H, H)),
            "in_proj_b": nrm(next(ks), (3 * H,)),
            "out_proj_w": nrm(next(ks), (H, H)),
            "out_proj_b": nrm(next(ks), (H,)),
            "lin1_w": nrm(next(ks), (ff, H)), "lin1_b": nrm(next(ks), (ff,)),
            "lin2_w": nrm(next(ks), (H, ff)), "lin2_b": nrm(next(ks), (H,)),
            "ln1_g": jnp.ones((H,), jnp.float32), "ln1_b": jnp.zeros((H,), jnp.float32),
            "ln2_g": jnp.ones((H,), jnp.float32), "ln2_b": jnp.zeros((H,), jnp.float32),
        })
    return p


def prepare_params(params):
    """One-time prep: transposes, QKV fuse + scale fold, slab packing, nn_ABCD."""
    H = N_HIDDENS
    Hh = H // 2
    f32 = jnp.float32
    scale = 1.0 / math.sqrt(H // N_HEADS)

    # Embedding as one block-diagonal (5, H) matmul: cols [sym | add].
    emb_w = jnp.zeros((5, H), f32)
    emb_w = emb_w.at[0:2, 0:Hh].set(params["emb_sym_w"].T)
    emb_w = emb_w.at[2:5, Hh:H].set(params["emb_add_w"].T)
    emb_b = jnp.concatenate([params["emb_sym_b"], params["emb_add_b"]])

    bias = jnp.zeros((N_BIAS_ROWS, 3 * H), f32)
    bias = bias.at[BIAS_EMB, 0:H].set(emb_b)

    qkv_blocks, w32_blocks = [], []
    for l, lp in enumerate(params["layers"]):
        wqkv = lp["in_proj_w"].T                      # (H, 3H), cols [Q | K | V]
        bqkv = lp["in_proj_b"]
        wqkv = wqkv.at[:, 0:H].multiply(scale)        # fold 1/sqrt(hd) into Q (exact)
        bqkv = bqkv.at[0:H].multiply(scale)
        qkv_blocks.append(wqkv)
        w32_blocks.extend([lp["out_proj_w"].T, lp["lin1_w"].T, lp["lin2_w"].T])
        r = _bias_layer_row(l)
        bias = bias.at[r + _B_QKV, :].set(bqkv)
        bias = bias.at[r + _B_OUT, 0:H].set(lp["out_proj_b"])
        bias = bias.at[r + _B_LIN1, 0:H].set(lp["lin1_b"])
        bias = bias.at[r + _B_LIN2, 0:H].set(lp["lin2_b"])
        bias = bias.at[r + _B_LN1G, 0:H].set(lp["ln1_g"])
        bias = bias.at[r + _B_LN1B, 0:H].set(lp["ln1_b"])
        bias = bias.at[r + _B_LN2G, 0:H].set(lp["ln2_g"])
        bias = bias.at[r + _B_LN2B, 0:H].set(lp["ln2_b"])

    w = params["conv_w"]                              # (H, H, 3)
    w32_blocks.extend([w[:, :, 0].T, w[:, :, 1].T, w[:, :, 2].T,
                       params["addattn_w"].T])
    dec_pad = jnp.zeros((H, H), f32).at[:, 0:2].set(params["dec_w"].T)
    w32_blocks.append(dec_pad)
    bias = bias.at[BIAS_CONV, 0:H].set(params["conv_b"])
    bias = bias.at[BIAS_ADDATTN, 0:H].set(params["addattn_b"])
    bias = bias.at[BIAS_DEC, 0:2].set(params["dec_b"])

    # nn_ABCD is fed a constant ones(1,1) input -> constant output; hoist it.
    dummy = jnp.ones((1, 1), f32)
    h = jax.nn.relu(dummy @ params["abcd_w1"].T + params["abcd_b1"])
    h = jax.nn.relu(h @ params["abcd_w2"].T + params["abcd_b2"])
    abcd = h @ params["abcd_w3"].T + params["abcd_b3"]

    return {
        "emb_w": emb_w,
        "pos_table": params["pos_table"],
        "qkv_w": jnp.concatenate(qkv_blocks, axis=0),         # (L*H, 3H)
        "w32": jnp.concatenate(w32_blocks, axis=0),           # (N_W32_BLOCKS*H, H)
        "bias": bias,                                         # (N_BIAS_ROWS, 3H)
        "abcd": abcd,                                         # (1, 4)
    }


# ------------------------------------------------------------------ wrapper --

def transformer_model_forward(prepped, src_sym, src_add):
    src_sym = src_sym[-CONTEXT_SIZE:]
    src_add = src_add[-CONTEXT_SIZE:]
    S, B, _ = src_sym.shape
    f32 = jnp.float32

    # Flatten batch-major: row index = b*S + s.
    x_in = jnp.concatenate([src_sym, src_add], axis=-1)            # (S, B, 5)
    x_in = jnp.transpose(x_in, (1, 0, 2)).reshape(B * S, 5)
    pos = prepped["pos_table"][:S]                                 # (S, H)

    out = pl.pallas_call(
        fused_forward_kernel,
        out_shape=jax.ShapeDtypeStruct((B, 2), f32),
        in_specs=[pl.BlockSpec(memory_space=_VMEM)] * 6,
        out_specs=pl.BlockSpec(memory_space=_VMEM),
    )(x_in, pos, prepped["emb_w"], prepped["qkv_w"], prepped["w32"],
      prepped["bias"])

    abcd = prepped["abcd"]
    return out, abcd[:, 0], abcd[:, 1], abcd[:, 2], abcd[:, 3]


# --------------------------------------------------- plain-JAX reference impl

def reference_forward(params, src_sym, src_add):
    src_sym = src_sym[-CONTEXT_SIZE:]
    src_add = src_add[-CONTEXT_SIZE:]
    S, B, _ = src_sym.shape
    H, nh = N_HIDDENS, N_HEADS
    hd = H // nh
    sym = src_sym @ params["emb_sym_w"].T + params["emb_sym_b"]
    add = src_add @ params["emb_add_w"].T + params["emb_add_b"]
    x = jnp.concatenate([sym, add], axis=-1) + params["pos_table"][:S][:, None, :]
    for lp in params["layers"]:
        wq, wk, wv = jnp.split(lp["in_proj_w"], 3, axis=0)
        bq, bk, bv = jnp.split(lp["in_proj_b"], 3, axis=0)
        q = (x @ wq.T + bq).reshape(S, B, nh, hd)
        k = (x @ wk.T + bk).reshape(S, B, nh, hd)
        v = (x @ wv.T + bv).reshape(S, B, nh, hd)
        sc = jnp.einsum("sbhd,tbhd->bhst", q, k) / math.sqrt(hd)
        p = jax.nn.softmax(sc, axis=-1)
        ctx = jnp.einsum("bhst,tbhd->sbhd", p, v).reshape(S, B, H)
        attn = ctx @ lp["out_proj_w"].T + lp["out_proj_b"]
        y = _layernorm(x + attn, lp["ln1_g"], lp["ln1_b"])
        ff = jax.nn.relu(y @ lp["lin1_w"].T + lp["lin1_b"]) @ lp["lin2_w"].T + lp["lin2_b"]
        x = _layernorm(y + ff, lp["ln2_g"], lp["ln2_b"])
    residual_last = x[-1]
    xpad = jnp.pad(x, ((1, 1), (0, 0), (0, 0)))
    w = params["conv_w"]
    conv = (jnp.einsum("sbi,oi->sbo", xpad[:-2], w[:, :, 0])
            + jnp.einsum("sbi,oi->sbo", xpad[1:-1], w[:, :, 1])
            + jnp.einsum("sbi,oi->sbo", xpad[2:], w[:, :, 2])
            + params["conv_b"])
    scores = jax.nn.softmax(conv @ params["addattn_w"].T + params["addattn_b"], axis=0)
    pooled = jnp.sum(scores * conv, axis=0) + residual_last
    out = 100.0 * (pooled @ params["dec_w"].T + params["dec_b"])
    dummy = jnp.ones((1, 1), jnp.float32)
    h = jax.nn.relu(dummy @ params["abcd_w1"].T + params["abcd_b1"])
    h = jax.nn.relu(h @ params["abcd_w2"].T + params["abcd_b2"])
    abcd = h @ params["abcd_w3"].T + params["abcd_b3"]
    return out, abcd[:, 0], abcd[:, 1], abcd[:, 2], abcd[:, 3]


# --------------------------------------------------------------------- main --

if __name__ == "__main__":
    key = jax.random.PRNGKey(0)
    kp, k1, k2 = jax.random.split(key, 3)
    params = init_params(kp)
    prepped = prepare_params(params)        # one-time weight prep (hoisted)

    S, B = 8, 2                             # seq=8, batch=2
    src_sym = jax.random.normal(k1, (S, B, 2), dtype=jnp.float32)
    src_add = jax.random.normal(k2, (S, B, 3), dtype=jnp.float32)

    fwd = jax.jit(transformer_model_forward)
    result = fwd(prepped, src_sym, src_add)
    jax.block_until_ready(result)

    ref = reference_forward(params, src_sym, src_add)
    for got, want in zip(result, ref):
        np.testing.assert_allclose(np.asarray(got), np.asarray(want),
                                   rtol=5e-2, atol=1e-1)

    print("KERNEL_OK")
</pallas_src>

<mosaic_0001>
module attributes {stable_mosaic.version = 11 : i64} {
  func.func @fused_forward_kernel(%arg0: memref<16x5xf32, #tpu.memory_space<vmem>>, %arg1: memref<8x32xf32, #tpu.memory_space<vmem>>, %arg2: memref<5x32xf32, #tpu.memory_space<vmem>>, %arg3: memref<64x96xf32, #tpu.memory_space<vmem>>, %arg4: memref<352x32xf32, #tpu.memory_space<vmem>>, %arg5: memref<20x96xf32, #tpu.memory_space<vmem>>, %arg6: memref<2x2xf32, #tpu.memory_space<vmem>>) attributes {dimension_semantics = [], scalar_prefetch = 0 : i64, scratch_operands = 0 : i64, tpu.core_type = #tpu.core_type<tc>} {
    %c0 = arith.constant 0 : index
    %c0_0 = arith.constant 0 : index
    %0 = vector.load %arg0[%c0, %c0_0] : memref<16x5xf32, #tpu.memory_space<vmem>>, vector<16x5xf32>
    %c0_1 = arith.constant 0 : index
    %c0_2 = arith.constant 0 : index
    %1 = vector.load %arg2[%c0_1, %c0_2] : memref<5x32xf32, #tpu.memory_space<vmem>>, vector<5x32xf32>
    %cst = arith.constant dense<0.000000e+00> : vector<16x32xf32>
    %2 = tpu.matmul %0, %1, %cst {dimension_numbers = #tpu.dot_dimension_numbers<[1], [0], [0], [1], [0, 0, 1, 1], [], []>} : vector<16x5xf32>, vector<5x32xf32>, vector<16x32xf32> -> vector<16x32xf32>
    %c0_3 = arith.constant 0 : index
    %c0_4 = arith.constant 0 : index
    %3 = vector.load %arg5[%c0_3, %c0_4] : memref<20x96xf32, #tpu.memory_space<vmem>>, vector<1x32xf32>
    %4 = vector.broadcast %3 : vector<1x32xf32> to vector<16x32xf32>
    %5 = arith.addf %2, %4 : vector<16x32xf32>
    %6 = vector.shape_cast %5 : vector<16x32xf32> to vector<2x8x32xf32>
    %c0_5 = arith.constant 0 : index
    %c0_6 = arith.constant 0 : index
    %7 = vector.load %arg1[%c0_5, %c0_6] : memref<8x32xf32, #tpu.memory_space<vmem>>, vector<8x32xf32>
    %8 = vector.shape_cast %7 : vector<8x32xf32> to vector<1x8x32xf32>
    %9 = vector.broadcast %8 : vector<1x8x32xf32> to vector<2x8x32xf32>
    %10 = arith.addf %6, %9 : vector<2x8x32xf32>
    %11 = vector.shape_cast %10 : vector<2x8x32xf32> to vector<16x32xf32>
    %c0_7 = arith.constant 0 : index
    %c0_8 = arith.constant 0 : index
    %12 = vector.load %arg3[%c0_7, %c0_8] : memref<64x96xf32, #tpu.memory_space<vmem>>, vector<32x96xf32>
    %cst_9 = arith.constant dense<0.000000e+00> : vector<16x96xf32>
    %13 = tpu.matmul %11, %12, %cst_9 {dimension_numbers = #tpu.dot_dimension_numbers<[1], [0], [0], [1], [0, 0, 1, 1], [], []>} : vector<16x32xf32>, vector<32x96xf32>, vector<16x96xf32> -> vector<16x96xf32>
    %c1 = arith.constant 1 : index
    %c0_10 = arith.constant 0 : index
    %14 = vector.load %arg5[%c1, %c0_10] : memref<20x96xf32, #tpu.memory_space<vmem>>, vector<1x96xf32>
    %15 = vector.broadcast %14 : vector<1x96xf32> to vector<16x96xf32>
    %16 = arith.addf %13, %15 : vector<16x96xf32>
    %17 = vector.shape_cast %16 : vector<16x96xf32> to vector<2x8x96xf32>
    %18 = vector.extract_strided_slice %17 {offsets = [0, 0, 0], sizes = [2, 8, 8], strides = [1, 1, 1]} : vector<2x8x96xf32> to vector<2x8x8xf32>
    %19 = vector.extract_strided_slice %17 {offsets = [0, 0, 32], sizes = [2, 8, 8], strides = [1, 1, 1]} : vector<2x8x96xf32> to vector<2x8x8xf32>
    %20 = vector.extract_strided_slice %17 {offsets = [0, 0, 64], sizes = [2, 8, 8], strides = [1, 1, 1]} : vector<2x8x96xf32> to vector<2x8x8xf32>
    "tpu.trace_start"() <{level = 10 : i32, message = "bqd,bkd->bqk"}> : () -> ()
    %cst_11 = arith.constant dense<0.000000e+00> : vector<2x8x8xf32>
    %21 = tpu.matmul %18, %19, %cst_11 {dimension_numbers = #tpu.dot_dimension_numbers<[2], [2], [1], [1], [0, 0, 0, 1, 1, 1], [0], [0]>} : vector<2x8x8xf32>, vector<2x8x8xf32>, vector<2x8x8xf32> -> vector<2x8x8xf32>
    "tpu.trace_stop"() : () -> ()
    %cst_12 = arith.constant dense<0xFF800000> : vector<2x8xf32>
    %22 = vector.multi_reduction <maximumf>, %21, %cst_12 [2] : vector<2x8x8xf32> to vector<2x8xf32>
    %23 = vector.shape_cast %22 : vector<2x8xf32> to vector<2x8x1xf32>
    %24 = vector.broadcast %23 : vector<2x8x1xf32> to vector<2x8x8xf32>
    %25 = arith.subf %21, %24 : vector<2x8x8xf32>
    %26 = math.exp %25 : vector<2x8x8xf32>
    %cst_13 = arith.constant dense<0.000000e+00> : vector<2x8xf32>
    %27 = vector.multi_reduction <add>, %26, %cst_13 [2] : vector<2x8x8xf32> to vector<2x8xf32>
    %28 = vector.shape_cast %27 : vector<2x8xf32> to vector<2x8x1xf32>
    %29 = tpu.reciprocal %28 {approx = true} : vector<2x8x1xf32> -> vector<2x8x1xf32>
    %30 = vector.broadcast %29 : vector<2x8x1xf32> to vector<2x8x8xf32>
    %31 = arith.mulf %26, %30 : vector<2x8x8xf32>
    "tpu.trace_start"() <{level = 10 : i32, message = "bqk,bkd->bqd"}> : () -> ()
    %cst_14 = arith.constant dense<0.000000e+00> : vector<2x8x8xf32>
    %32 = tpu.matmul %31, %20, %cst_14 {dimension_numbers = #tpu.dot_dimension_numbers<[2], [1], [1], [2], [0, 0, 0, 1, 1, 2], [0], [0]>} : vector<2x8x8xf32>, vector<2x8x8xf32>, vector<2x8x8xf32> -> vector<2x8x8xf32>
    "tpu.trace_stop"() : () -> ()
    %33 = vector.extract_strided_slice %17 {offsets = [0, 0, 8], sizes = [2, 8, 8], strides = [1, 1, 1]} : vector<2x8x96xf32> to vector<2x8x8xf32>
    %34 = vector.extract_strided_slice %17 {offsets = [0, 0, 40], sizes = [2, 8, 8], strides = [1, 1, 1]} : vector<2x8x96xf32> to vector<2x8x8xf32>
    %35 = vector.extract_strided_slice %17 {offsets = [0, 0, 72], sizes = [2, 8, 8], strides = [1, 1, 1]} : vector<2x8x96xf32> to vector<2x8x8xf32>
    "tpu.trace_start"() <{level = 10 : i32, message = "bqd,bkd->bqk"}> : () -> ()
    %cst_15 = arith.constant dense<0.000000e+00> : vector<2x8x8xf32>
    %36 = tpu.matmul %33, %34, %cst_15 {dimension_numbers = #tpu.dot_dimension_numbers<[2], [2], [1], [1], [0, 0, 0, 1, 1, 1], [0], [0]>} : vector<2x8x8xf32>, vector<2x8x8xf32>, vector<2x8x8xf32> -> vector<2x8x8xf32>
    "tpu.trace_stop"() : () -> ()
    %cst_16 = arith.constant dense<0xFF800000> : vector<2x8xf32>
    %37 = vector.multi_reduction <maximumf>, %36, %cst_16 [2] : vector<2x8x8xf32> to vector<2x8xf32>
    %38 = vector.shape_cast %37 : vector<2x8xf32> to vector<2x8x1xf32>
    %39 = vector.broadcast %38 : vector<2x8x1xf32> to vector<2x8x8xf32>
    %40 = arith.subf %36, %39 : vector<2x8x8xf32>
    %41 = math.exp %40 : vector<2x8x8xf32>
    %cst_17 = arith.constant dense<0.000000e+00> : vector<2x8xf32>
    %42 = vector.multi_reduction <add>, %41, %cst_17 [2] : vector<2x8x8xf32> to vector<2x8xf32>
    %43 = vector.shape_cast %42 : vector<2x8xf32> to vector<2x8x1xf32>
    %44 = tpu.reciprocal %43 {approx = true} : vector<2x8x1xf32> -> vector<2x8x1xf32>
    %45 = vector.broadcast %44 : vector<2x8x1xf32> to vector<2x8x8xf32>
    %46 = arith.mulf %41, %45 : vector<2x8x8xf32>
    "tpu.trace_start"() <{level = 10 : i32, message = "bqk,bkd->bqd"}> : () -> ()
    %cst_18 = arith.constant dense<0.000000e+00> : vector<2x8x8xf32>
    %47 = tpu.matmul %46, %35, %cst_18 {dimension_numbers = #tpu.dot_dimension_numbers<[2], [1], [1], [2], [0, 0, 0, 1, 1, 2], [0], [0]>} : vector<2x8x8xf32>, vector<2x8x8xf32>, vector<2x8x8xf32> -> vector<2x8x8xf32>
    "tpu.trace_stop"() : () -> ()
    %48 = vector.extract_strided_slice %17 {offsets = [0, 0, 16], sizes = [2, 8, 8], strides = [1, 1, 1]} : vector<2x8x96xf32> to vector<2x8x8xf32>
    %49 = vector.extract_strided_slice %17 {offsets = [0, 0, 48], sizes = [2, 8, 8], strides = [1, 1, 1]} : vector<2x8x96xf32> to vector<2x8x8xf32>
    %50 = vector.extract_strided_slice %17 {offsets = [0, 0, 80], sizes = [2, 8, 8], strides = [1, 1, 1]} : vector<2x8x96xf32> to vector<2x8x8xf32>
    "tpu.trace_start"() <{level = 10 : i32, message = "bqd,bkd->bqk"}> : () -> ()
    %cst_19 = arith.constant dense<0.000000e+00> : vector<2x8x8xf32>
    %51 = tpu.matmul %48, %49, %cst_19 {dimension_numbers = #tpu.dot_dimension_numbers<[2], [2], [1], [1], [0, 0, 0, 1, 1, 1], [0], [0]>} : vector<2x8x8xf32>, vector<2x8x8xf32>, vector<2x8x8xf32> -> vector<2x8x8xf32>
    "tpu.trace_stop"() : () -> ()
    %cst_20 = arith.constant dense<0xFF800000> : vector<2x8xf32>
    %52 = vector.multi_reduction <maximumf>, %51, %cst_20 [2] : vector<2x8x8xf32> to vector<2x8xf32>
    %53 = vector.shape_cast %52 : vector<2x8xf32> to vector<2x8x1xf32>
    %54 = vector.broadcast %53 : vector<2x8x1xf32> to vector<2x8x8xf32>
    %55 = arith.subf %51, %54 : vector<2x8x8xf32>
    %56 = math.exp %55 : vector<2x8x8xf32>
    %cst_21 = arith.constant dense<0.000000e+00> : vector<2x8xf32>
    %57 = vector.multi_reduction <add>, %56, %cst_21 [2] : vector<2x8x8xf32> to vector<2x8xf32>
    %58 = vector.shape_cast %57 : vector<2x8xf32> to vector<2x8x1xf32>
    %59 = tpu.reciprocal %58 {approx = true} : vector<2x8x1xf32> -> vector<2x8x1xf32>
    %60 = vector.broadcast %59 : vector<2x8x1xf32> to vector<2x8x8xf32>
    %61 = arith.mulf %56, %60 : vector<2x8x8xf32>
    "tpu.trace_start"() <{level = 10 : i32, message = "bqk,bkd->bqd"}> : () -> ()
    %cst_22 = arith.constant dense<0.000000e+00> : vector<2x8x8xf32>
    %62 = tpu.matmul %61, %50, %cst_22 {dimension_numbers = #tpu.dot_dimension_numbers<[2], [1], [1], [2], [0, 0, 0, 1, 1, 2], [0], [0]>} : vector<2x8x8xf32>, vector<2x8x8xf32>, vector<2x8x8xf32> -> vector<2x8x8xf32>
    "tpu.trace_stop"() : () -> ()
    %63 = vector.extract_strided_slice %17 {offsets = [0, 0, 24], sizes = [2, 8, 8], strides = [1, 1, 1]} : vector<2x8x96xf32> to vector<2x8x8xf32>
    %64 = vector.extract_strided_slice %17 {offsets = [0, 0, 56], sizes = [2, 8, 8], strides = [1, 1, 1]} : vector<2x8x96xf32> to vector<2x8x8xf32>
    %65 = vector.extract_strided_slice %17 {offsets = [0, 0, 88], sizes = [2, 8, 8], strides = [1, 1, 1]} : vector<2x8x96xf32> to vector<2x8x8xf32>
    "tpu.trace_start"() <{level = 10 : i32, message = "bqd,bkd->bqk"}> : () -> ()
    %cst_23 = arith.constant dense<0.000000e+00> : vector<2x8x8xf32>
    %66 = tpu.matmul %63, %64, %cst_23 {dimension_numbers = #tpu.dot_dimension_numbers<[2], [2], [1], [1], [0, 0, 0, 1, 1, 1], [0], [0]>} : vector<2x8x8xf32>, vector<2x8x8xf32>, vector<2x8x8xf32> -> vector<2x8x8xf32>
    "tpu.trace_stop"() : () -> ()
    %cst_24 = arith.constant dense<0xFF800000> : vector<2x8xf32>
    %67 = vector.multi_reduction <maximumf>, %66, %cst_24 [2] : vector<2x8x8xf32> to vector<2x8xf32>
    %68 = vector.shape_cast %67 : vector<2x8xf32> to vector<2x8x1xf32>
    %69 = vector.broadcast %68 : vector<2x8x1xf32> to vector<2x8x8xf32>
    %70 = arith.subf %66, %69 : vector<2x8x8xf32>
    %71 = math.exp %70 : vector<2x8x8xf32>
    %cst_25 = arith.constant dense<0.000000e+00> : vector<2x8xf32>
    %72 = vector.multi_reduction <add>, %71, %cst_25 [2] : vector<2x8x8xf32> to vector<2x8xf32>
    %73 = vector.shape_cast %72 : vector<2x8xf32> to vector<2x8x1xf32>
    %74 = tpu.reciprocal %73 {approx = true} : vector<2x8x1xf32> -> vector<2x8x1xf32>
    %75 = vector.broadcast %74 : vector<2x8x1xf32> to vector<2x8x8xf32>
    %76 = arith.mulf %71, %75 : vector<2x8x8xf32>
    "tpu.trace_start"() <{level = 10 : i32, message = "bqk,bkd->bqd"}> : () -> ()
    %cst_26 = arith.constant dense<0.000000e+00> : vector<2x8x8xf32>
    %77 = tpu.matmul %76, %65, %cst_26 {dimension_numbers = #tpu.dot_dimension_numbers<[2], [1], [1], [2], [0, 0, 0, 1, 1, 2], [0], [0]>} : vector<2x8x8xf32>, vector<2x8x8xf32>, vector<2x8x8xf32> -> vector<2x8x8xf32>
    "tpu.trace_stop"() : () -> ()
    %78 = tpu.concatenate %32, %47, %62, %77 in 2 : vector<2x8x8xf32>, vector<2x8x8xf32>, vector<2x8x8xf32>, vector<2x8x8xf32> -> vector<2x8x32xf32>
    %79 = vector.shape_cast %78 : vector<2x8x32xf32> to vector<16x32xf32>
    %c0_27 = arith.constant 0 : index
    %c0_28 = arith.constant 0 : index
    %80 = vector.load %arg4[%c0_27, %c0_28] : memref<352x32xf32, #tpu.memory_space<vmem>>, vector<32x32xf32>
    %cst_29 = arith.constant dense<0.000000e+00> : vector<16x32xf32>
    %81 = tpu.matmul %79, %80, %cst_29 {dimension_numbers = #tpu.dot_dimension_numbers<[1], [0], [0], [1], [0, 0, 1, 1], [], []>} : vector<16x32xf32>, vector<32x32xf32>, vector<16x32xf32> -> vector<16x32xf32>
    %c2 = arith.constant 2 : index
    %c0_30 = arith.constant 0 : index
    %82 = vector.load %arg5[%c2, %c0_30] : memref<20x96xf32, #tpu.memory_space<vmem>>, vector<1x32xf32>
    %83 = vector.broadcast %82 : vector<1x32xf32> to vector<16x32xf32>
    %84 = arith.addf %81, %83 : vector<16x32xf32>
    %85 = arith.addf %11, %84 : vector<16x32xf32>
    %c5 = arith.constant 5 : index
    %c0_31 = arith.constant 0 : index
    %86 = vector.load %arg5[%c5, %c0_31] : memref<20x96xf32, #tpu.memory_space<vmem>>, vector<1x32xf32>
    %c6 = arith.constant 6 : index
    %c0_32 = arith.constant 0 : index
    %87 = vector.load %arg5[%c6, %c0_32] : memref<20x96xf32, #tpu.memory_space<vmem>>, vector<1x32xf32>
    %cst_33 = arith.constant dense<0.000000e+00> : vector<16xf32>
    %88 = vector.multi_reduction <add>, %85, %cst_33 [1] : vector<16x32xf32> to vector<16xf32>
    %89 = vector.shape_cast %88 : vector<16xf32> to vector<16x1xf32>
    %cst_34 = arith.constant 3.200000e+01 : f32
    %90 = vector.broadcast %cst_34 : f32 to vector<16x1xf32>
    %91 = arith.divf %89, %90 : vector<16x1xf32>
    %92 = vector.broadcast %91 : vector<16x1xf32> to vector<16x32xf32>
    %93 = arith.subf %85, %92 : vector<16x32xf32>
    %94 = arith.mulf %93, %93 : vector<16x32xf32>
    %cst_35 = arith.constant dense<0.000000e+00> : vector<16xf32>
    %95 = vector.multi_reduction <add>, %94, %cst_35 [1] : vector<16x32xf32> to vector<16xf32>
    %96 = vector.shape_cast %95 : vector<16xf32> to vector<16x1xf32>
    %cst_36 = arith.constant 3.200000e+01 : f32
    %97 = vector.broadcast %cst_36 : f32 to vector<16x1xf32>
    %98 = arith.divf %96, %97 : vector<16x1xf32>
    %99 = vector.broadcast %91 : vector<16x1xf32> to vector<16x32xf32>
    %100 = arith.subf %85, %99 : vector<16x32xf32>
    %cst_37 = arith.constant 9.99999974E-6 : f32
    %101 = vector.broadcast %cst_37 : f32 to vector<16x1xf32>
    %102 = arith.addf %98, %101 : vector<16x1xf32>
    %103 = math.rsqrt %102 : vector<16x1xf32>
    %104 = vector.broadcast %103 : vector<16x1xf32> to vector<16x32xf32>
    %105 = arith.mulf %100, %104 : vector<16x32xf32>
    %106 = vector.broadcast %86 : vector<1x32xf32> to vector<16x32xf32>
    %107 = arith.mulf %105, %106 : vector<16x32xf32>
    %108 = vector.broadcast %87 : vector<1x32xf32> to vector<16x32xf32>
    %109 = arith.addf %107, %108 : vector<16x32xf32>
    %c32 = arith.constant 32 : index
    %c0_38 = arith.constant 0 : index
    %110 = vector.load %arg4[%c32, %c0_38] : memref<352x32xf32, #tpu.memory_space<vmem>>, vector<32x32xf32>
    %cst_39 = arith.constant dense<0.000000e+00> : vector<16x32xf32>
    %111 = tpu.matmul %109, %110, %cst_39 {dimension_numbers = #tpu.dot_dimension_numbers<[1], [0], [0], [1], [0, 0, 1, 1], [], []>} : vector<16x32xf32>, vector<32x32xf32>, vector<16x32xf32> -> vector<16x32xf32>
    %c3 = arith.constant 3 : index
    %c0_40 = arith.constant 0 : index
    %112 = vector.load %arg5[%c3, %c0_40] : memref<20x96xf32, #tpu.memory_space<vmem>>, vector<1x32xf32>
    %113 = vector.broadcast %112 : vector<1x32xf32> to vector<16x32xf32>
    %114 = arith.addf %111, %113 : vector<16x32xf32>
    %cst_41 = arith.constant 0.000000e+00 : f32
    %115 = vector.broadcast %cst_41 : f32 to vector<16x32xf32>
    %116 = arith.maximumf %114, %115 : vector<16x32xf32>
    %c64 = arith.constant 64 : index
    %c0_42 = arith.constant 0 : index
    %117 = vector.load %arg4[%c64, %c0_42] : memref<352x32xf32, #tpu.memory_space<vmem>>, vector<32x32xf32>
    %cst_43 = arith.constant dense<0.000000e+00> : vector<16x32xf32>
    %118 = tpu.matmul %116, %117, %cst_43 {dimension_numbers = #tpu.dot_dimension_numbers<[1], [0], [0], [1], [0, 0, 1, 1], [], []>} : vector<16x32xf32>, vector<32x32xf32>, vector<16x32xf32> -> vector<16x32xf32>
    %c4 = arith.constant 4 : index
    %c0_44 = arith.constant 0 : index
    %119 = vector.load %arg5[%c4, %c0_44] : memref<20x96xf32, #tpu.memory_space<vmem>>, vector<1x32xf32>
    %120 = vector.broadcast %119 : vector<1x32xf32> to vector<16x32xf32>
    %121 = arith.addf %118, %120 : vector<16x32xf32>
    %122 = arith.addf %109, %121 : vector<16x32xf32>
    %c7 = arith.constant 7 : index
    %c0_45 = arith.constant 0 : index
    %123 = vector.load %arg5[%c7, %c0_45] : memref<20x96xf32, #tpu.memory_space<vmem>>, vector<1x32xf32>
    %c8 = arith.constant 8 : index
    %c0_46 = arith.constant 0 : index
    %124 = vector.load %arg5[%c8, %c0_46] : memref<20x96xf32, #tpu.memory_space<vmem>>, vector<1x32xf32>
    %cst_47 = arith.constant dense<0.000000e+00> : vector<16xf32>
    %125 = vector.multi_reduction <add>, %122, %cst_47 [1] : vector<16x32xf32> to vector<16xf32>
    %126 = vector.shape_cast %125 : vector<16xf32> to vector<16x1xf32>
    %cst_48 = arith.constant 3.200000e+01 : f32
    %127 = vector.broadcast %cst_48 : f32 to vector<16x1xf32>
    %128 = arith.divf %126, %127 : vector<16x1xf32>
    %129 = vector.broadcast %128 : vector<16x1xf32> to vector<16x32xf32>
    %130 = arith.subf %122, %129 : vector<16x32xf32>
    %131 = arith.mulf %130, %130 : vector<16x32xf32>
    %cst_49 = arith.constant dense<0.000000e+00> : vector<16xf32>
    %132 = vector.multi_reduction <add>, %131, %cst_49 [1] : vector<16x32xf32> to vector<16xf32>
    %133 = vector.shape_cast %132 : vector<16xf32> to vector<16x1xf32>
    %cst_50 = arith.constant 3.200000e+01 : f32
    %134 = vector.broadcast %cst_50 : f32 to vector<16x1xf32>
    %135 = arith.divf %133, %134 : vector<16x1xf32>
    %136 = vector.broadcast %128 : vector<16x1xf32> to vector<16x32xf32>
    %137 = arith.subf %122, %136 : vector<16x32xf32>
    %cst_51 = arith.constant 9.99999974E-6 : f32
    %138 = vector.broadcast %cst_51 : f32 to vector<16x1xf32>
    %139 = arith.addf %135, %138 : vector<16x1xf32>
    %140 = math.rsqrt %139 : vector<16x1xf32>
    %141 = vector.broadcast %140 : vector<16x1xf32> to vector<16x32xf32>
    %142 = arith.mulf %137, %141 : vector<16x32xf32>
    %143 = vector.broadcast %123 : vector<1x32xf32> to vector<16x32xf32>
    %144 = arith.mulf %142, %143 : vector<16x32xf32>
    %145 = vector.broadcast %124 : vector<1x32xf32> to vector<16x32xf32>
    %146 = arith.addf %144, %145 : vector<16x32xf32>
    %c32_52 = arith.constant 32 : index
    %c0_53 = arith.constant 0 : index
    %147 = vector.load %arg3[%c32_52, %c0_53] : memref<64x96xf32, #tpu.memory_space<vmem>>, vector<32x96xf32>
    %cst_54 = arith.constant dense<0.000000e+00> : vector<16x96xf32>
    %148 = tpu.matmul %146, %147, %cst_54 {dimension_numbers = #tpu.dot_dimension_numbers<[1], [0], [0], [1], [0, 0, 1, 1], [], []>} : vector<16x32xf32>, vector<32x96xf32>, vector<16x96xf32> -> vector<16x96xf32>
    %c9 = arith.constant 9 : index
    %c0_55 = arith.constant 0 : index
    %149 = vector.load %arg5[%c9, %c0_55] : memref<20x96xf32, #tpu.memory_space<vmem>>, vector<1x96xf32>
    %150 = vector.broadcast %149 : vector<1x96xf32> to vector<16x96xf32>
    %151 = arith.addf %148, %150 : vector<16x96xf32>
    %152 = vector.shape_cast %151 : vector<16x96xf32> to vector<2x8x96xf32>
    %153 = vector.extract_strided_slice %152 {offsets = [0, 0, 0], sizes = [2, 8, 8], strides = [1, 1, 1]} : vector<2x8x96xf32> to vector<2x8x8xf32>
    %154 = vector.extract_strided_slice %152 {offsets = [0, 0, 32], sizes = [2, 8, 8], strides = [1, 1, 1]} : vector<2x8x96xf32> to vector<2x8x8xf32>
    %155 = vector.extract_strided_slice %152 {offsets = [0, 0, 64], sizes = [2, 8, 8], strides = [1, 1, 1]} : vector<2x8x96xf32> to vector<2x8x8xf32>
    "tpu.trace_start"() <{level = 10 : i32, message = "bqd,bkd->bqk"}> : () -> ()
    %cst_56 = arith.constant dense<0.000000e+00> : vector<2x8x8xf32>
    %156 = tpu.matmul %153, %154, %cst_56 {dimension_numbers = #tpu.dot_dimension_numbers<[2], [2], [1], [1], [0, 0, 0, 1, 1, 1], [0], [0]>} : vector<2x8x8xf32>, vector<2x8x8xf32>, vector<2x8x8xf32> -> vector<2x8x8xf32>
    "tpu.trace_stop"() : () -> ()
    %cst_57 = arith.constant dense<0xFF800000> : vector<2x8xf32>
    %157 = vector.multi_reduction <maximumf>, %156, %cst_57 [2] : vector<2x8x8xf32> to vector<2x8xf32>
    %158 = vector.shape_cast %157 : vector<2x8xf32> to vector<2x8x1xf32>
    %159 = vector.broadcast %158 : vector<2x8x1xf32> to vector<2x8x8xf32>
    %160 = arith.subf %156, %159 : vector<2x8x8xf32>
    %161 = math.exp %160 : vector<2x8x8xf32>
    %cst_58 = arith.constant dense<0.000000e+00> : vector<2x8xf32>
    %162 = vector.multi_reduction <add>, %161, %cst_58 [2] : vector<2x8x8xf32> to vector<2x8xf32>
    %163 = vector.shape_cast %162 : vector<2x8xf32> to vector<2x8x1xf32>
    %164 = tpu.reciprocal %163 {approx = true} : vector<2x8x1xf32> -> vector<2x8x1xf32>
    %165 = vector.broadcast %164 : vector<2x8x1xf32> to vector<2x8x8xf32>
    %166 = arith.mulf %161, %165 : vector<2x8x8xf32>
    "tpu.trace_start"() <{level = 10 : i32, message = "bqk,bkd->bqd"}> : () -> ()
    %cst_59 = arith.constant dense<0.000000e+00> : vector<2x8x8xf32>
    %167 = tpu.matmul %166, %155, %cst_59 {dimension_numbers = #tpu.dot_dimension_numbers<[2], [1], [1], [2], [0, 0, 0, 1, 1, 2], [0], [0]>} : vector<2x8x8xf32>, vector<2x8x8xf32>, vector<2x8x8xf32> -> vector<2x8x8xf32>
    "tpu.trace_stop"() : () -> ()
    %168 = vector.extract_strided_slice %152 {offsets = [0, 0, 8], sizes = [2, 8, 8], strides = [1, 1, 1]} : vector<2x8x96xf32> to vector<2x8x8xf32>
    %169 = vector.extract_strided_slice %152 {offsets = [0, 0, 40], sizes = [2, 8, 8], strides = [1, 1, 1]} : vector<2x8x96xf32> to vector<2x8x8xf32>
    %170 = vector.extract_strided_slice %152 {offsets = [0, 0, 72], sizes = [2, 8, 8], strides = [1, 1, 1]} : vector<2x8x96xf32> to vector<2x8x8xf32>
    "tpu.trace_start"() <{level = 10 : i32, message = "bqd,bkd->bqk"}> : () -> ()
    %cst_60 = arith.constant dense<0.000000e+00> : vector<2x8x8xf32>
    %171 = tpu.matmul %168, %169, %cst_60 {dimension_numbers = #tpu.dot_dimension_numbers<[2], [2], [1], [1], [0, 0, 0, 1, 1, 1], [0], [0]>} : vector<2x8x8xf32>, vector<2x8x8xf32>, vector<2x8x8xf32> -> vector<2x8x8xf32>
    "tpu.trace_stop"() : () -> ()
    %cst_61 = arith.constant dense<0xFF800000> : vector<2x8xf32>
    %172 = vector.multi_reduction <maximumf>, %171, %cst_61 [2] : vector<2x8x8xf32> to vector<2x8xf32>
    %173 = vector.shape_cast %172 : vector<2x8xf32> to vector<2x8x1xf32>
    %174 = vector.broadcast %173 : vector<2x8x1xf32> to vector<2x8x8xf32>
    %175 = arith.subf %171, %174 : vector<2x8x8xf32>
    %176 = math.exp %175 : vector<2x8x8xf32>
    %cst_62 = arith.constant dense<0.000000e+00> : vector<2x8xf32>
    %177 = vector.multi_reduction <add>, %176, %cst_62 [2] : vector<2x8x8xf32> to vector<2x8xf32>
    %178 = vector.shape_cast %177 : vector<2x8xf32> to vector<2x8x1xf32>
    %179 = tpu.reciprocal %178 {approx = true} : vector<2x8x1xf32> -> vector<2x8x1xf32>
    %180 = vector.broadcast %179 : vector<2x8x1xf32> to vector<2x8x8xf32>
    %181 = arith.mulf %176, %180 : vector<2x8x8xf32>
    "tpu.trace_start"() <{level = 10 : i32, message = "bqk,bkd->bqd"}> : () -> ()
    %cst_63 = arith.constant dense<0.000000e+00> : vector<2x8x8xf32>
    %182 = tpu.matmul %181, %170, %cst_63 {dimension_numbers = #tpu.dot_dimension_numbers<[2], [1], [1], [2], [0, 0, 0, 1, 1, 2], [0], [0]>} : vector<2x8x8xf32>, vector<2x8x8xf32>, vector<2x8x8xf32> -> vector<2x8x8xf32>
    "tpu.trace_stop"() : () -> ()
    %183 = vector.extract_strided_slice %152 {offsets = [0, 0, 16], sizes = [2, 8, 8], strides = [1, 1, 1]} : vector<2x8x96xf32> to vector<2x8x8xf32>
    %184 = vector.extract_strided_slice %152 {offsets = [0, 0, 48], sizes = [2, 8, 8], strides = [1, 1, 1]} : vector<2x8x96xf32> to vector<2x8x8xf32>
    %185 = vector.extract_strided_slice %152 {offsets = [0, 0, 80], sizes = [2, 8, 8], strides = [1, 1, 1]} : vector<2x8x96xf32> to vector<2x8x8xf32>
    "tpu.trace_start"() <{level = 10 : i32, message = "bqd,bkd->bqk"}> : () -> ()
    %cst_64 = arith.constant dense<0.000000e+00> : vector<2x8x8xf32>
    %186 = tpu.matmul %183, %184, %cst_64 {dimension_numbers = #tpu.dot_dimension_numbers<[2], [2], [1], [1], [0, 0, 0, 1, 1, 1], [0], [0]>} : vector<2x8x8xf32>, vector<2x8x8xf32>, vector<2x8x8xf32> -> vector<2x8x8xf32>
    "tpu.trace_stop"() : () -> ()
    %cst_65 = arith.constant dense<0xFF800000> : vector<2x8xf32>
    %187 = vector.multi_reduction <maximumf>, %186, %cst_65 [2] : vector<2x8x8xf32> to vector<2x8xf32>
    %188 = vector.shape_cast %187 : vector<2x8xf32> to vector<2x8x1xf32>
    %189 = vector.broadcast %188 : vector<2x8x1xf32> to vector<2x8x8xf32>
    %190 = arith.subf %186, %189 : vector<2x8x8xf32>
    %191 = math.exp %190 : vector<2x8x8xf32>
    %cst_66 = arith.constant dense<0.000000e+00> : vector<2x8xf32>
    %192 = vector.multi_reduction <add>, %191, %cst_66 [2] : vector<2x8x8xf32> to vector<2x8xf32>
    %193 = vector.shape_cast %192 : vector<2x8xf32> to vector<2x8x1xf32>
    %194 = tpu.reciprocal %193 {approx = true} : vector<2x8x1xf32> -> vector<2x8x1xf32>
    %195 = vector.broadcast %194 : vector<2x8x1xf32> to vector<2x8x8xf32>
    %196 = arith.mulf %191, %195 : vector<2x8x8xf32>
    "tpu.trace_start"() <{level = 10 : i32, message = "bqk,bkd->bqd"}> : () -> ()
    %cst_67 = arith.constant dense<0.000000e+00> : vector<2x8x8xf32>
    %197 = tpu.matmul %196, %185, %cst_67 {dimension_numbers = #tpu.dot_dimension_numbers<[2], [1], [1], [2], [0, 0, 0, 1, 1, 2], [0], [0]>} : vector<2x8x8xf32>, vector<2x8x8xf32>, vector<2x8x8xf32> -> vector<2x8x8xf32>
    "tpu.trace_stop"() : () -> ()
    %198 = vector.extract_strided_slice %152 {offsets = [0, 0, 24], sizes = [2, 8, 8], strides = [1, 1, 1]} : vector<2x8x96xf32> to vector<2x8x8xf32>
    %199 = vector.extract_strided_slice %152 {offsets = [0, 0, 56], sizes = [2, 8, 8], strides = [1, 1, 1]} : vector<2x8x96xf32> to vector<2x8x8xf32>
    %200 = vector.extract_strided_slice %152 {offsets = [0, 0, 88], sizes = [2, 8, 8], strides = [1, 1, 1]} : vector<2x8x96xf32> to vector<2x8x8xf32>
    "tpu.trace_start"() <{level = 10 : i32, message = "bqd,bkd->bqk"}> : () -> ()
    %cst_68 = arith.constant dense<0.000000e+00> : vector<2x8x8xf32>
    %201 = tpu.matmul %198, %199, %cst_68 {dimension_numbers = #tpu.dot_dimension_numbers<[2], [2], [1], [1], [0, 0, 0, 1, 1, 1], [0], [0]>} : vector<2x8x8xf32>, vector<2x8x8xf32>, vector<2x8x8xf32> -> vector<2x8x8xf32>
    "tpu.trace_stop"() : () -> ()
    %cst_69 = arith.constant dense<0xFF800000> : vector<2x8xf32>
    %202 = vector.multi_reduction <maximumf>, %201, %cst_69 [2] : vector<2x8x8xf32> to vector<2x8xf32>
    %203 = vector.shape_cast %202 : vector<2x8xf32> to vector<2x8x1xf32>
    %204 = vector.broadcast %203 : vector<2x8x1xf32> to vector<2x8x8xf32>
    %205 = arith.subf %201, %204 : vector<2x8x8xf32>
    %206 = math.exp %205 : vector<2x8x8xf32>
    %cst_70 = arith.constant dense<0.000000e+00> : vector<2x8xf32>
    %207 = vector.multi_reduction <add>, %206, %cst_70 [2] : vector<2x8x8xf32> to vector<2x8xf32>
    %208 = vector.shape_cast %207 : vector<2x8xf32> to vector<2x8x1xf32>
    %209 = tpu.reciprocal %208 {approx = true} : vector<2x8x1xf32> -> vector<2x8x1xf32>
    %210 = vector.broadcast %209 : vector<2x8x1xf32> to vector<2x8x8xf32>
    %211 = arith.mulf %206, %210 : vector<2x8x8xf32>
    "tpu.trace_start"() <{level = 10 : i32, message = "bqk,bkd->bqd"}> : () -> ()
    %cst_71 = arith.constant dense<0.000000e+00> : vector<2x8x8xf32>
    %212 = tpu.matmul %211, %200, %cst_71 {dimension_numbers = #tpu.dot_dimension_numbers<[2], [1], [1], [2], [0, 0, 0, 1, 1, 2], [0], [0]>} : vector<2x8x8xf32>, vector<2x8x8xf32>, vector<2x8x8xf32> -> vector<2x8x8xf32>
    "tpu.trace_stop"() : () -> ()
    %213 = tpu.concatenate %167, %182, %197, %212 in 2 : vector<2x8x8xf32>, vector<2x8x8xf32>, vector<2x8x8xf32>, vector<2x8x8xf32> -> vector<2x8x32xf32>
    %214 = vector.shape_cast %213 : vector<2x8x32xf32> to vector<16x32xf32>
    %c96 = arith.constant 96 : index
    %c0_72 = arith.constant 0 : index
    %215 = vector.load %arg4[%c96, %c0_72] : memref<352x32xf32, #tpu.memory_space<vmem>>, vector<32x32xf32>
    %cst_73 = arith.constant dense<0.000000e+00> : vector<16x32xf32>
    %216 = tpu.matmul %214, %215, %cst_73 {dimension_numbers = #tpu.dot_dimension_numbers<[1], [0], [0], [1], [0, 0, 1, 1], [], []>} : vector<16x32xf32>, vector<32x32xf32>, vector<16x32xf32> -> vector<16x32xf32>
    %c10 = arith.constant 10 : index
    %c0_74 = arith.constant 0 : index
    %217 = vector.load %arg5[%c10, %c0_74] : memref<20x96xf32, #tpu.memory_space<vmem>>, vector<1x32xf32>
    %218 = vector.broadcast %217 : vector<1x32xf32> to vector<16x32xf32>
    %219 = arith.addf %216, %218 : vector<16x32xf32>
    %220 = arith.addf %146, %219 : vector<16x32xf32>
    %c13 = arith.constant 13 : index
    %c0_75 = arith.constant 0 : index
    %221 = vector.load %arg5[%c13, %c0_75] : memref<20x96xf32, #tpu.memory_space<vmem>>, vector<1x32xf32>
    %c14 = arith.constant 14 : index
    %c0_76 = arith.constant 0 : index
    %222 = vector.load %arg5[%c14, %c0_76] : memref<20x96xf32, #tpu.memory_space<vmem>>, vector<1x32xf32>
    %cst_77 = arith.constant dense<0.000000e+00> : vector<16xf32>
    %223 = vector.multi_reduction <add>, %220, %cst_77 [1] : vector<16x32xf32> to vector<16xf32>
    %224 = vector.shape_cast %223 : vector<16xf32> to vector<16x1xf32>
    %cst_78 = arith.constant 3.200000e+01 : f32
    %225 = vector.broadcast %cst_78 : f32 to vector<16x1xf32>
    %226 = arith.divf %224, %225 : vector<16x1xf32>
    %227 = vector.broadcast %226 : vector<16x1xf32> to vector<16x32xf32>
    %228 = arith.subf %220, %227 : vector<16x32xf32>
    %229 = arith.mulf %228, %228 : vector<16x32xf32>
    %cst_79 = arith.constant dense<0.000000e+00> : vector<16xf32>
    %230 = vector.multi_reduction <add>, %229, %cst_79 [1] : vector<16x32xf32> to vector<16xf32>
    %231 = vector.shape_cast %230 : vector<16xf32> to vector<16x1xf32>
    %cst_80 = arith.constant 3.200000e+01 : f32
    %232 = vector.broadcast %cst_80 : f32 to vector<16x1xf32>
    %233 = arith.divf %231, %232 : vector<16x1xf32>
    %234 = vector.broadcast %226 : vector<16x1xf32> to vector<16x32xf32>
    %235 = arith.subf %220, %234 : vector<16x32xf32>
    %cst_81 = arith.constant 9.99999974E-6 : f32
    %236 = vector.broadcast %cst_81 : f32 to vector<16x1xf32>
    %237 = arith.addf %233, %236 : vector<16x1xf32>
    %238 = math.rsqrt %237 : vector<16x1xf32>
    %239 = vector.broadcast %238 : vector<16x1xf32> to vector<16x32xf32>
    %240 = arith.mulf %235, %239 : vector<16x32xf32>
    %241 = vector.broadcast %221 : vector<1x32xf32> to vector<16x32xf32>
    %242 = arith.mulf %240, %241 : vector<16x32xf32>
    %243 = vector.broadcast %222 : vector<1x32xf32> to vector<16x32xf32>
    %244 = arith.addf %242, %243 : vector<16x32xf32>
    %c128 = arith.constant 128 : index
    %c0_82 = arith.constant 0 : index
    %245 = vector.load %arg4[%c128, %c0_82] : memref<352x32xf32, #tpu.memory_space<vmem>>, vector<32x32xf32>
    %cst_83 = arith.constant dense<0.000000e+00> : vector<16x32xf32>
    %246 = tpu.matmul %244, %245, %cst_83 {dimension_numbers = #tpu.dot_dimension_numbers<[1], [0], [0], [1], [0, 0, 1, 1], [], []>} : vector<16x32xf32>, vector<32x32xf32>, vector<16x32xf32> -> vector<16x32xf32>
    %c11 = arith.constant 11 : index
    %c0_84 = arith.constant 0 : index
    %247 = vector.load %arg5[%c11, %c0_84] : memref<20x96xf32, #tpu.memory_space<vmem>>, vector<1x32xf32>
    %248 = vector.broadcast %247 : vector<1x32xf32> to vector<16x32xf32>
    %249 = arith.addf %246, %248 : vector<16x32xf32>
    %cst_85 = arith.constant 0.000000e+00 : f32
    %250 = vector.broadcast %cst_85 : f32 to vector<16x32xf32>
    %251 = arith.maximumf %249, %250 : vector<16x32xf32>
    %c160 = arith.constant 160 : index
    %c0_86 = arith.constant 0 : index
    %252 = vector.load %arg4[%c160, %c0_86] : memref<352x32xf32, #tpu.memory_space<vmem>>, vector<32x32xf32>
    %cst_87 = arith.constant dense<0.000000e+00> : vector<16x32xf32>
    %253 = tpu.matmul %251, %252, %cst_87 {dimension_numbers = #tpu.dot_dimension_numbers<[1], [0], [0], [1], [0, 0, 1, 1], [], []>} : vector<16x32xf32>, vector<32x32xf32>, vector<16x32xf32> -> vector<16x32xf32>
    %c12 = arith.constant 12 : index
    %c0_88 = arith.constant 0 : index
    %254 = vector.load %arg5[%c12, %c0_88] : memref<20x96xf32, #tpu.memory_space<vmem>>, vector<1x32xf32>
    %255 = vector.broadcast %254 : vector<1x32xf32> to vector<16x32xf32>
    %256 = arith.addf %253, %255 : vector<16x32xf32>
    %257 = arith.addf %244, %256 : vector<16x32xf32>
    %c15 = arith.constant 15 : index
    %c0_89 = arith.constant 0 : index
    %258 = vector.load %arg5[%c15, %c0_89] : memref<20x96xf32, #tpu.memory_space<vmem>>, vector<1x32xf32>
    %c16 = arith.constant 16 : index
    %c0_90 = arith.constant 0 : index
    %259 = vector.load %arg5[%c16, %c0_90] : memref<20x96xf32, #tpu.memory_space<vmem>>, vector<1x32xf32>
    %cst_91 = arith.constant dense<0.000000e+00> : vector<16xf32>
    %260 = vector.multi_reduction <add>, %257, %cst_91 [1] : vector<16x32xf32> to vector<16xf32>
    %261 = vector.shape_cast %260 : vector<16xf32> to vector<16x1xf32>
    %cst_92 = arith.constant 3.200000e+01 : f32
    %262 = vector.broadcast %cst_92 : f32 to vector<16x1xf32>
    %263 = arith.divf %261, %262 : vector<16x1xf32>
    %264 = vector.broadcast %263 : vector<16x1xf32> to vector<16x32xf32>
    %265 = arith.subf %257, %264 : vector<16x32xf32>
    %266 = arith.mulf %265, %265 : vector<16x32xf32>
    %cst_93 = arith.constant dense<0.000000e+00> : vector<16xf32>
    %267 = vector.multi_reduction <add>, %266, %cst_93 [1] : vector<16x32xf32> to vector<16xf32>
    %268 = vector.shape_cast %267 : vector<16xf32> to vector<16x1xf32>
    %cst_94 = arith.constant 3.200000e+01 : f32
    %269 = vector.broadcast %cst_94 : f32 to vector<16x1xf32>
    %270 = arith.divf %268, %269 : vector<16x1xf32>
    %271 = vector.broadcast %263 : vector<16x1xf32> to vector<16x32xf32>
    %272 = arith.subf %257, %271 : vector<16x32xf32>
    %cst_95 = arith.constant 9.99999974E-6 : f32
    %273 = vector.broadcast %cst_95 : f32 to vector<16x1xf32>
    %274 = arith.addf %270, %273 : vector<16x1xf32>
    %275 = math.rsqrt %274 : vector<16x1xf32>
    %276 = vector.broadcast %275 : vector<16x1xf32> to vector<16x32xf32>
    %277 = arith.mulf %272, %276 : vector<16x32xf32>
    %278 = vector.broadcast %258 : vector<1x32xf32> to vector<16x32xf32>
    %279 = arith.mulf %277, %278 : vector<16x32xf32>
    %280 = vector.broadcast %259 : vector<1x32xf32> to vector<16x32xf32>
    %281 = arith.addf %279, %280 : vector<16x32xf32>
    %282 = tpu.iota {dimensions = array<i32: 0>} : vector<16x1xi32>
    %c8_i32 = arith.constant 8 : i32
    %c0_i32 = arith.constant 0 : i32
    %283 = arith.cmpi eq, %c8_i32, %c0_i32 : i32
    %c1_i32 = arith.constant 1 : i32
    %284 = arith.select %283, %c1_i32, %c8_i32 : i32
    %285 = vector.broadcast %284 : i32 to vector<16x1xi32>
    %286 = arith.remsi %282, %285 : vector<16x1xi32>
    %c0_i32_96 = arith.constant 0 : i32
    %287 = vector.broadcast %c0_i32_96 : i32 to vector<16x1xi32>
    %288 = arith.cmpi ne, %286, %287 : vector<16x1xi32>
    %c0_i32_97 = arith.constant 0 : i32
    %289 = vector.broadcast %c0_i32_97 : i32 to vector<16x1xi32>
    %290 = arith.cmpi slt, %286, %289 : vector<16x1xi32>
    %c0_i32_98 = arith.constant 0 : i32
    %291 = arith.cmpi slt, %284, %c0_i32_98 : i32
    %292 = vector.broadcast %291 : i1 to vector<16x1xi1>
    %293 = vector.broadcast %292 : vector<16x1xi1> to vector<16x1xi1>
    %294 = arith.xori %290, %293 : vector<16x1xi1>
    %295 = arith.andi %294, %288 : vector<16x1xi1>
    %296 = vector.broadcast %284 : i32 to vector<16x1xi32>
    %297 = arith.addi %286, %296 : vector<16x1xi32>
    %298 = arith.select %295, %297, %286 : vector<16x1xi1>, vector<16x1xi32>
    %cst_99 = arith.constant 0.000000e+00 : f32
    %299 = vector.broadcast %cst_99 : f32 to vector<1x32xf32>
    %c0_i32_100 = arith.constant 0 : i32
    %300 = vector.broadcast %c0_i32_100 : i32 to vector<16x1xi32>
    %301 = arith.cmpi eq, %298, %300 : vector<16x1xi32>
    %302 = vector.extract_strided_slice %281 {offsets = [0, 0], sizes = [15, 32], strides = [1, 1]} : vector<16x32xf32> to vector<15x32xf32>
    %303 = tpu.concatenate %299, %302 in 0 : vector<1x32xf32>, vector<15x32xf32> -> vector<16x32xf32>
    %cst_101 = arith.constant 0.000000e+00 : f32
    %304 = vector.shape_cast %301 : vector<16x1xi1> to vector<16x1xi1>
    %305 = vector.broadcast %304 : vector<16x1xi1> to vector<16x32xi1>
    %306 = vector.broadcast %cst_101 : f32 to vector<16x32xf32>
    %307 = arith.select %305, %306, %303 : vector<16x32xi1>, vector<16x32xf32>
    %c7_i32 = arith.constant 7 : i32
    %308 = vector.broadcast %c7_i32 : i32 to vector<16x1xi32>
    %309 = arith.cmpi eq, %298, %308 : vector<16x1xi32>
    %310 = vector.extract_strided_slice %281 {offsets = [1, 0], sizes = [15, 32], strides = [1, 1]} : vector<16x32xf32> to vector<15x32xf32>
    %311 = tpu.concatenate %310, %299 in 0 : vector<15x32xf32>, vector<1x32xf32> -> vector<16x32xf32>
    %cst_102 = arith.constant 0.000000e+00 : f32
    %312 = vector.shape_cast %309 : vector<16x1xi1> to vector<16x1xi1>
    %313 = vector.broadcast %312 : vector<16x1xi1> to vector<16x32xi1>
    %314 = vector.broadcast %cst_102 : f32 to vector<16x32xf32>
    %315 = arith.select %313, %314, %311 : vector<16x32xi1>, vector<16x32xf32>
    %c192 = arith.constant 192 : index
    %c0_103 = arith.constant 0 : index
    %316 = vector.load %arg4[%c192, %c0_103] : memref<352x32xf32, #tpu.memory_space<vmem>>, vector<32x32xf32>
    %cst_104 = arith.constant dense<0.000000e+00> : vector<16x32xf32>
    %317 = tpu.matmul %307, %316, %cst_104 {dimension_numbers = #tpu.dot_dimension_numbers<[1], [0], [0], [1], [0, 0, 1, 1], [], []>} : vector<16x32xf32>, vector<32x32xf32>, vector<16x32xf32> -> vector<16x32xf32>
    %c224 = arith.constant 224 : index
    %c0_105 = arith.constant 0 : index
    %318 = vector.load %arg4[%c224, %c0_105] : memref<352x32xf32, #tpu.memory_space<vmem>>, vector<32x32xf32>
    %cst_106 = arith.constant dense<0.000000e+00> : vector<16x32xf32>
    %319 = tpu.matmul %281, %318, %cst_106 {dimension_numbers = #tpu.dot_dimension_numbers<[1], [0], [0], [1], [0, 0, 1, 1], [], []>} : vector<16x32xf32>, vector<32x32xf32>, vector<16x32xf32> -> vector<16x32xf32>
    %320 = arith.addf %317, %319 : vector<16x32xf32>
    %c256 = arith.constant 256 : index
    %c0_107 = arith.constant 0 : index
    %321 = vector.load %arg4[%c256, %c0_107] : memref<352x32xf32, #tpu.memory_space<vmem>>, vector<32x32xf32>
    %cst_108 = arith.constant dense<0.000000e+00> : vector<16x32xf32>
    %322 = tpu.matmul %315, %321, %cst_108 {dimension_numbers = #tpu.dot_dimension_numbers<[1], [0], [0], [1], [0, 0, 1, 1], [], []>} : vector<16x32xf32>, vector<32x32xf32>, vector<16x32xf32> -> vector<16x32xf32>
    %323 = arith.addf %320, %322 : vector<16x32xf32>
    %c17 = arith.constant 17 : index
    %c0_109 = arith.constant 0 : index
    %324 = vector.load %arg5[%c17, %c0_109] : memref<20x96xf32, #tpu.memory_space<vmem>>, vector<1x32xf32>
    %325 = vector.broadcast %324 : vector<1x32xf32> to vector<16x32xf32>
    %326 = arith.addf %323, %325 : vector<16x32xf32>
    %c288 = arith.constant 288 : index
    %c0_110 = arith.constant 0 : index
    %327 = vector.load %arg4[%c288, %c0_110] : memref<352x32xf32, #tpu.memory_space<vmem>>, vector<32x32xf32>
    %cst_111 = arith.constant dense<0.000000e+00> : vector<16x32xf32>
    %328 = tpu.matmul %326, %327, %cst_111 {dimension_numbers = #tpu.dot_dimension_numbers<[1], [0], [0], [1], [0, 0, 1, 1], [], []>} : vector<16x32xf32>, vector<32x32xf32>, vector<16x32xf32> -> vector<16x32xf32>
    %c18 = arith.constant 18 : index
    %c0_112 = arith.constant 0 : index
    %329 = vector.load %arg5[%c18, %c0_112] : memref<20x96xf32, #tpu.memory_space<vmem>>, vector<1x32xf32>
    %330 = vector.broadcast %329 : vector<1x32xf32> to vector<16x32xf32>
    %331 = arith.addf %328, %330 : vector<16x32xf32>
    %332 = vector.shape_cast %331 : vector<16x32xf32> to vector<2x8x32xf32>
    %cst_113 = arith.constant dense<0xFF800000> : vector<2x32xf32>
    %333 = vector.multi_reduction <maximumf>, %332, %cst_113 [1] : vector<2x8x32xf32> to vector<2x32xf32>
    %334 = vector.shape_cast %333 : vector<2x32xf32> to vector<2x1x32xf32>
    %335 = vector.broadcast %334 : vector<2x1x32xf32> to vector<2x8x32xf32>
    %336 = arith.subf %332, %335 : vector<2x8x32xf32>
    %337 = math.exp %336 : vector<2x8x32xf32>
    %cst_114 = arith.constant dense<0.000000e+00> : vector<2x32xf32>
    %338 = vector.multi_reduction <add>, %337, %cst_114 [1] : vector<2x8x32xf32> to vector<2x32xf32>
    %339 = vector.shape_cast %338 : vector<2x32xf32> to vector<2x1x32xf32>
    %340 = tpu.reciprocal %339 {approx = true} : vector<2x1x32xf32> -> vector<2x1x32xf32>
    %341 = vector.broadcast %340 : vector<2x1x32xf32> to vector<2x8x32xf32>
    %342 = arith.mulf %337, %341 : vector<2x8x32xf32>
    %343 = vector.shape_cast %326 : vector<16x32xf32> to vector<2x8x32xf32>
    %344 = arith.mulf %342, %343 : vector<2x8x32xf32>
    %cst_115 = arith.constant dense<0.000000e+00> : vector<2x32xf32>
    %345 = vector.multi_reduction <add>, %344, %cst_115 [1] : vector<2x8x32xf32> to vector<2x32xf32>
    %346 = vector.shape_cast %345 : vector<2x32xf32> to vector<2x1x32xf32>
    %347 = vector.shape_cast %281 : vector<16x32xf32> to vector<2x8x32xf32>
    %348 = vector.extract_strided_slice %347 {offsets = [0, 7, 0], sizes = [2, 1, 32], strides = [1, 1, 1]} : vector<2x8x32xf32> to vector<2x1x32xf32>
    %349 = arith.addf %346, %348 : vector<2x1x32xf32>
    %350 = vector.shape_cast %349 : vector<2x1x32xf32> to vector<2x32xf32>
    %c320 = arith.constant 320 : index
    %c0_116 = arith.constant 0 : index
    %351 = vector.load %arg4[%c320, %c0_116] : memref<352x32xf32, #tpu.memory_space<vmem>>, vector<32x32xf32>
    %cst_117 = arith.constant dense<0.000000e+00> : vector<2x32xf32>
    %352 = tpu.matmul %350, %351, %cst_117 {dimension_numbers = #tpu.dot_dimension_numbers<[1], [0], [0], [1], [0, 0, 1, 1], [], []>} : vector<2x32xf32>, vector<32x32xf32>, vector<2x32xf32> -> vector<2x32xf32>
    %353 = vector.extract_strided_slice %352 {offsets = [0, 0], sizes = [2, 2], strides = [1, 1]} : vector<2x32xf32> to vector<2x2xf32>
    %c19 = arith.constant 19 : index
    %c0_118 = arith.constant 0 : index
    %354 = vector.load %arg5[%c19, %c0_118] : memref<20x96xf32, #tpu.memory_space<vmem>>, vector<1x2xf32>
    %355 = vector.broadcast %354 : vector<1x2xf32> to vector<2x2xf32>
    %356 = arith.addf %353, %355 : vector<2x2xf32>
    %cst_119 = arith.constant 1.000000e+02 : f32
    %357 = vector.broadcast %cst_119 : f32 to vector<2x2xf32>
    %358 = arith.mulf %357, %356 : vector<2x2xf32>
    %c0_120 = arith.constant 0 : index
    %c0_121 = arith.constant 0 : index
    %359 = vector.load %arg6[%c0_120, %c0_121] : memref<2x2xf32, #tpu.memory_space<vmem>>, vector<2x2xf32>
    tpu.vector_store %arg6[%c0_120, %c0_121], %358 {strides = array<i32>} : memref<2x2xf32, #tpu.memory_space<vmem>>, vector<2x2xf32>,
    return
  }
}

</mosaic_0001>

<bundles_post_ra>
// kernel: transformer_model_forward.1
= control target key start
LH: loop header
LB: loop body
LE: loop exit
PB: predicated region body
PF: predicated region fallthrough
CT: control target
= control target key end

     0   :  { %vm36_vm0 = vcmask 1044480   ;;  %vm29_vm1 = vcmask 39936   ;;  %s2835_s0 = inlined_call_operand.vmem [shape: f32[16,5], index: 0, kind: input, shape index: {}]   ;;  %s2836_s1 = inlined_call_operand.vmem [shape: f32[8,32], index: 1, kind: input, shape index: {}]   ;;  %s2837_s2 = inlined_call_operand.vmem [shape: f32[5,32], index: 2, kind: input, shape index: {}]   ;;  %s2838_s3 = inlined_call_operand.vmem [shape: f32[64,96], index: 3, kind: input, shape index: {}]   ;;  %s2839_s4 = inlined_call_operand.vmem [shape: f32[352,32], index: 4, kind: input, shape index: {}]   ;;  %s2840_s5 = inlined_call_operand.vmem [shape: f32[20,96], index: 5, kind: input, shape index: {}]   ;;  %s2841_s6 = inlined_call_operand.hbm [shape: f32[2,2], index: 6, kind: output, shape index: {}]  }
   0x1   :  { %v26_v0 = vld [vmem:[%s2837_s2] sm:$0x1f]  ;;  %v69_v2 = vld [vmem:[%s2838_s3 + $0x18] sm:$0xff]  ;;  %v25_v3 = vld [vmem:[%s2835_s0 + $0x8] sm:$0xff] }
   0x2   :  { %v24_v1 = vld [vmem:[%s2835_s0] sm:$0xff]  ;;  %1980 = vmatpush.msk.msra.mxu0 %vm36_vm0, %v26_v0  ;;  %91 = vmatpush.msra.mxu1 %v69_v2 }
   0x3   :  { %1981 = vmatmul.msk.f32.vlgmr.msra.gmra.mxu0 %vm29_vm1, %v24_v1 }
   0x4   :  { %11 = vsyncpa [#allocation3], 0  ;;  %v68_v4 = vld [vmem:[%s2838_s3 + $0x10] sm:$0xff]  ;;  %v67_v5 = vld [vmem:[%s2838_s3 + $0x8] sm:$0xff]  ;;  %vm72_vm2 = vcmask 261120   ;;  %s2224_s15 = smov 96  }
   0x5   :  { %92 = vmatpush.msra.mxu1 %v68_v4  ;;  %v66_v6 = vld [vmem:[%s2838_s3] sm:$0xff]  ;;  %s2225_s16 = smov 64   ;;  %s2226_s17 = smov 120   ;;  %vm105_vm3 = vcmask 64512   ;;  %vm647_vm4 = vcmask 130048   ;;  %vm650_vm5 = vcmask 195584  }
   0x6   :  { %v2087_v7 = vld [vmem:[%s2840_s5] ss:$0 sm:$0xff]  ;;  %v2088_v15 = vld [vmem:[%s2840_s5 + $0x1] ss:$0 sm:$0xff]  ;;  %s2227_s18 = smov 80   ;;  %s2228_s19 = smov 112  }
   0x7   :  { %93 = vmatpush.msra.mxu1 %v67_v5  ;;  %v63_v9 = vld [vmem:[%s2836_s1] sm:$0xff]  ;;  %s2223_s1 = smov 88   ;;  %s2229_s20 = smov 104  }
   0x8   :  { %s2230_s21 = smov 72   ;;  %s2231_s22 = smov 56  }
   0x9   :  { %94 = vmatpush.msra.mxu1 %v66_v6  ;;  %s2232_s23 = smov 40   ;;  %s2233_s24 = smov 48  }
   0xa   :  { %s2234_s25 = smov 8   ;;  %s2235_s26 = smov 16  }
   0xb   :  { %1982 = vmatmul.msk.f32.gmra.mxu0 %vm29_vm1, %v25_v3  ;;  %s2236_s27 = smov 24   ;;  %s2238_s10 = smov [#allocation2]  }
  0x80   :  { %v57_v8 = vpop.f32.mrf.mxu0 }
  0x81   :  { %v58_v10 = vadd.f32 %v2087_v7, %v57_v8 }
  0x83   :  { %v2301_v11 = vadd.f32 %v63_v9, %v58_v10 }
  0x85   :  { %1983 = vmatmul.msk.f32.vlgmr.msra.gmra.mxu1 %vm72_vm2, %v2301_v11 }
  0x88   :  { %v60_v12 = vpop.f32.mrf.mxu0 }
  0x89   :  { %v61_v13 = vadd.f32 %v2087_v7, %v60_v12 }
  0x8b   :  { %v2305_v14 = vadd.f32 %v63_v9, %v61_v13 }
  0x8d   :  { %1984 = vmatmul.msk.f32.gmra.mxu1 %vm72_vm2, %v2305_v14 }
 0x102   :  { %v96_v16 = vpop.f32.mrf.mxu1 }
 0x103   :  { %v2312_v17 = vadd.f32 %v2088_v15, %v96_v16 }
 0x105   :  { %233 = vrot.lane.b32.xlu2 %v2312_v17, %s2223_s1  ;;  %103 = vrot.lane.b32.xlu0 %v2312_v17, %s2224_s15 }
 0x10a   :  { %v99_v18 = vpop.f32.mrf.mxu1 }
 0x10b   :  { %v2318_v19 = vadd.f32 %v2088_v15, %v99_v18 }
 0x10d   :  { %179 = vrot.lane.b32.xlu2 %v2312_v17, %s2225_s16  ;;  %131 = vrot.lane.b32.xlu1 %v2318_v19, %s2224_s15  ;;  %v2072_v13 = vpack.i.bf16 %v2318_v19, %v2312_v17 }
 0x115   :  { %231 = vrot.lane.b32.xlu2 %v2312_v17, %s2226_s17 }
 0x11d   :  { %261 = vrot.lane.b32.xlu2 %v2318_v19, %s2223_s1 }
 0x125   :  { %363 = vrot.lane.b32.xlu2 %v2312_v17, %s2227_s18 }
 0x12d   :  { %259 = vrot.lane.b32.xlu2 %v2318_v19, %s2226_s17 }
 0x135   :  { %361 = vrot.lane.b32.xlu2 %v2312_v17, %s2228_s19 }
 0x13d   :  { %389 = vrot.lane.b32.xlu2 %v2318_v19, %s2228_s19 }
 0x145   :  { %491 = vrot.lane.b32.xlu2 %v2312_v17, %s2229_s20 }
 0x14d   :  { %519 = vrot.lane.b32.xlu2 %v2318_v19, %s2229_s20 }
 0x15f   :  { %v234_v20 = vpop.permute.xlu2 %233 }
 0x160   :  { %1991 = vmatpush.xpose.msk.msrb.mxu0 %vm105_vm3, %v234_v20 }
 0x167   :  { %v180_v21 = vpop.permute.xlu2 %179 }
 0x16f   :  { %v232_v22 = vpop.permute.xlu2 %231 }
 0x170   :  { %1992 = vmatmul.msk.f32.vlgmr.msrb.gmra.mxu0 %vm105_vm3, %v232_v22 }
 0x177   :  { %v262_v23 = vpop.permute.xlu2 %261  ;;  %v104_v24 = vpop.permute.xlu0 %103 }
 0x178   :  { %1985 = vmatpush.xpose.msk.msra.mxu2 %vm105_vm3, %v104_v24 }
 0x17b   :  { %1986 = vmatmul.msk.f32.vlgmr.msra.gmra.mxu2 %vm105_vm3, %v2312_v17 }
 0x17c   :  { %200 = vmatpush.msrb.mxu2 %v180_v21 }
 0x17e   :  { %1993 = vmatpush.xpose.msk.msra.mxu2 %vm105_vm3, %v262_v23 }
 0x17f   :  { %v364_v25 = vpop.permute.xlu2 %363  ;;  %v132_v28 = vpop.permute.xlu1 %131 }
 0x180   :  { %1997 = vmatpush.xpose.msk.msra.mxu0 %vm105_vm3, %v364_v25  ;;  %1987 = vmatpush.xpose.msk.msra.mxu3 %vm105_vm3, %v132_v28 }
 0x183   :  { %1988 = vmatmul.msk.f32.vlgmr.msra.gmra.mxu3 %vm105_vm3, %v2318_v19 }
 0x187   :  { %v260_v26 = vpop.permute.xlu2 %259 }
 0x18f   :  { %v362_v27 = vpop.permute.xlu2 %361 }
 0x190   :  { %1998 = vmatmul.msk.f32.vlgmr.msra.gmra.mxu0 %vm105_vm3, %v362_v27 }
 0x197   :  { %v390_v52 = vpop.permute.xlu2 %389 }
 0x19f   :  { %v492_v54 = vpop.permute.xlu2 %491 }
 0x1a7   :  { %v520_v55 = vpop.permute.xlu2 %519 }
 0x1ed   :  { %v256_v31 = vpop.f32.mrf.mxu0 }
 0x1ee   :  { %v287_v34 = vsel %vm105_vm3, %v256_v31, -inf }
 0x1fe   :  { %v127_v29 = vpop.f32.mrf.mxu2 }
 0x1ff   :  { %v157_v30 = vsel %vm105_vm3, %v127_v29, -inf }
 0x200   :  { %158 = vmax.xlane.f32.xlu0 %v157_v30 }
 0x206   :  { %v154_v45 = vpop.f32.mrf.mxu3 }
 0x207   :  { %v160_v46 = vsel %vm105_vm3, %v154_v45, -inf }
 0x20d   :  { %v386_v32 = vpop.f32.mrf.mxu0 }
 0x20e   :  { %v417_v33 = vsel %vm105_vm3, %v386_v32, -inf }
 0x20f   :  { %418 = vmax.xlane.f32.xlu2 %v417_v33 }
 0x214   :  { %391 = vrot.lane.b32.xlu0 %v2318_v19, %s2227_s18 }
 0x21c   :  { %521 = vrot.lane.b32.xlu0 %v2318_v19, %s2230_s21 }
 0x246   :  { %288 = vmax.xlane.f32.xlu0 %v287_v34 }
 0x273   :  { %v159_v35 = vpop.xlane.xlu0 %158 }
 0x274   :  { %v163_v36 = vsub.f32 %v127_v29, %v159_v35 }
 0x276   :  { %v165_v37 = vmul.f32 1.442695, %v163_v36 }
 0x278   :  { %2107 = vpow2.f32 %v165_v37 }
 0x27e   :  { %v2108_v38 = vpop.eup %2107 }
 0x27f   :  { %v169_v39 = vsel %vm105_vm3, %v2108_v38, 0.0 }
 0x280   :  { %170 = vadd.xlane.f32.xlu1 %v169_v39 }
 0x282   :  { %v419_v59 = vpop.xlane.xlu2 %418 }
 0x283   :  { %v423_v60 = vsub.f32 %v386_v32, %v419_v59 }
 0x285   :  { %v425_v61 = vmul.f32 1.442695, %v423_v60 }
 0x286   :  { %v392_v40 = vpop.permute.xlu0 %391 }
 0x28e   :  { %v522_v41 = vpop.permute.xlu0 %521 }
 0x299   :  { %493 = vrot.lane.b32.xlu1 %v2312_v17, %s2230_s21 }
 0x2b9   :  { %v289_v42 = vpop.xlane.xlu0 %288 }
 0x2ba   :  { %v293_v43 = vsub.f32 %v256_v31, %v289_v42 }
 0x2bc   :  { %v295_v44 = vmul.f32 1.442695, %v293_v43 }
 0x2be   :  { %2109 = vpow2.f32 %v295_v44 }
 0x2c3   :  { %161 = vmax.xlane.f32.xlu1 %v160_v46 }
 0x2c4   :  { %v2362_v47 = vpop.eup %2109 }
 0x2c5   :  { %v299_v48 = vsel %vm105_vm3, %v2362_v47, 0.0 }
 0x2c6   :  { %300 = vadd.xlane.f32.xlu2 %v299_v48 }
 0x2dc   :  { %205 = vrot.lane.b32.xlu1 %v2318_v19, %s2225_s16 }
 0x2f3   :  { %v171_v49 = vpop.xlane.xlu1 %170 }
 0x2f4   :  { %2111 = vrcp.f32 %v171_v49 }
 0x2f5   :  { %2113 = vpow2.f32 %v425_v61 }
 0x2fa   :  { %v2112_v50 = vpop.eup %2111 }
 0x2fb   :  { %v177_v51 = vmul.f32 %v2112_v50, %v2108_v38  ;;  %v2381_v6 = vpop.eup %2113 }
 0x2fc   :  { %v429_v7 = vsel %vm105_vm3, %v2381_v6, 0.0 }
 0x2fd   :  { %1989 = vmatmul.msk.f32.vlgmr.msrb.gmra.mxu2 %vm105_vm3, %v177_v51 }
 0x2fe   :  { %1999 = vmatpush.xpose.msk.msrb.mxu2 %vm105_vm3, %v392_v40 }
 0x305   :  { %1994 = vmatmul.msk.f32.vlgmr.msra.gmra.mxu2 %vm105_vm3, %v260_v26 }
 0x306   :  { %2005 = vmatpush.xpose.msk.msra.mxu2 %vm105_vm3, %v522_v41 }
 0x30b   :  { %v494_v53 = vpop.permute.xlu1 %493 }
 0x30c   :  { %2003 = vmatpush.xpose.msk.msrb.mxu0 %vm105_vm3, %v494_v53 }
 0x30d   :  { %2000 = vmatmul.msk.f32.vlgmr.msrb.gmra.mxu2 %vm105_vm3, %v390_v52 }
 0x30f   :  { %2004 = vmatmul.msk.f32.vlgmr.msrb.gmra.mxu0 %vm105_vm3, %v492_v54 }
 0x315   :  { %2006 = vmatmul.msk.f32.vlgmr.msra.gmra.mxu2 %vm105_vm3, %v520_v55 }
 0x336   :  { %v162_v56 = vpop.xlane.xlu1 %161 }
 0x337   :  { %v164_v0 = vsub.f32 %v154_v45, %v162_v56 }
 0x339   :  { %v167_v3 = vmul.f32 1.442695, %v164_v0  ;;  %v301_v15 = vpop.xlane.xlu2 %300 }
 0x33b   :  { %2115 = vpow2.f32 %v167_v3 }
 0x341   :  { %v2116_v10 = vpop.eup %2115 }
 0x342   :  { %v172_v12 = vsel %vm105_vm3, %v2116_v10, 0.0 }
 0x34e   :  { %v206_v57 = vpop.permute.xlu1 %205 }
 0x34f   :  { %226 = vmatpush.msrb.mxu3 %v206_v57 }
 0x380   :  { %v2376_v58 = vpop.f32.mrf.mxu2 }
 0x388   :  { %v284_v62 = vpop.f32.mrf.mxu2 }
 0x389   :  { %v290_v63 = vsel %vm105_vm3, %v284_v62, -inf }
 0x38a   :  { %291 = vmax.xlane.f32.xlu1 %v290_v63 }
 0x38c   :  { %v516_v1 = vpop.f32.mrf.mxu0 }
 0x38d   :  { %v547_v2 = vsel %vm105_vm3, %v516_v1, -inf }
 0x38e   :  { %548 = vmax.xlane.f32.xlu0 %v547_v2 }
 0x390   :  { %v414_v4 = vpop.f32.mrf.mxu2 }
 0x391   :  { %v420_v5 = vsel %vm105_vm3, %v414_v4, -inf }
 0x392   :  { %421 = vmax.xlane.f32.xlu2 %v420_v5 }
 0x396   :  { %430 = vadd.xlane.f32.xlu0 %v429_v7  ;;  %v656_v7 = vld [vmem:[%s2839_s4 + $0x18] sm:$0xff] }
 0x397   :  { %677 = vmatpush.msra.mxu0 %v656_v7 }
 0x398   :  { %v544_v8 = vpop.f32.mrf.mxu2 }
 0x399   :  { %v550_v9 = vsel %vm105_vm3, %v544_v8, -inf }
 0x39a   :  { %551 = vmax.xlane.f32.xlu1 %v550_v9  ;;  %v654_v9 = vld [vmem:[%s2839_s4 + $0x8] sm:$0xff] }
 0x39e   :  { %173 = vadd.xlane.f32.xlu0 %v172_v12 }
 0x3aa   :  { %2073 = vrot.lane.b32.xlu2 %v2072_v13, %s2231_s22 }
 0x3b2   :  { %569 = vrot.lane.b32.xlu2 %v2312_v17, %s2232_s23 }
 0x3b3   :  { %439 = vrot.lane.b32.xlu1 %v2312_v17, %s2233_s24 }
 0x3ba   :  { %595 = vrot.lane.b32.xlu2 %v2318_v19, %s2232_s23 }
 0x3fd   :  { %v292_v16 = vpop.xlane.xlu1 %291 }
 0x3fe   :  { %v294_v21 = vsub.f32 %v284_v62, %v292_v16 }
 0x400   :  { %v297_v24 = vmul.f32 1.442695, %v294_v21 }
 0x401   :  { %v549_v18 = vpop.xlane.xlu0 %548 }
 0x402   :  { %v553_v20 = vsub.f32 %v516_v1, %v549_v18 }
 0x404   :  { %v555_v22 = vmul.f32 1.442695, %v553_v20 }
 0x405   :  { %v422_v23 = vpop.xlane.xlu2 %421 }
 0x406   :  { %2117 = vpow2.f32 %v555_v22  ;;  %v424_v27 = vsub.f32 %v414_v4, %v422_v23 }
 0x407   :  { %2119 = vpow2.f32 %v297_v24 }
 0x408   :  { %v427_v33 = vmul.f32 1.442695, %v424_v27 }
 0x409   :  { %v431_v25 = vpop.xlane.xlu0 %430 }
 0x40c   :  { %v2118_v26 = vpop.eup %2117 }
 0x40d   :  { %v552_v28 = vpop.xlane.xlu1 %551  ;;  %v2074_v29 = vpop.permute.xlu2 %2073  ;;  %v559_v17 = vsel %vm105_vm3, %v2118_v26, 0.0 }
 0x40e   :  { %v554_v30 = vsub.f32 %v544_v8, %v552_v28  ;;  %v2075_v31 = vunpack.i.l.bf16 %v2074_v29  ;;  %560 = vadd.xlane.f32.xlu0 %v559_v17  ;;  %v2076_v32 = vunpack.i.h.bf16 %v2074_v29  ;;  %v2120_v36 = vpop.eup %2119  ;;  %v655_v8 = vld [vmem:[%s2839_s4 + $0x10] sm:$0xff] }
 0x40f   :  { %v302_v37 = vsel %vm105_vm3, %v2120_v36, 0.0  ;;  %678 = vmatpush.msra.mxu0 %v655_v8 }
 0x410   :  { %v557_v34 = vmul.f32 1.442695, %v554_v30  ;;  %330 = vmatpush.msra.mxu3 %v2075_v31  ;;  %356 = vmatpush.msrb.mxu1 %v2076_v32 }
 0x411   :  { %v174_v35 = vpop.xlane.xlu0 %173  ;;  %679 = vmatpush.msra.mxu0 %v654_v9 }
 0x412   :  { %2121 = vpow2.f32 %v557_v34  ;;  %v2237_v34 = vmov 32.0  }
 0x413   :  { %2123 = vrcp.f32 %v174_v35 }
 0x414   :  { %2125 = vpow2.f32 %v427_v33 }
 0x415   :  { %2127 = vrcp.f32 %v301_v15  ;;  %v570_v48 = vpop.permute.xlu2 %569 }
 0x416   :  { %303 = vadd.xlane.f32.xlu0 %v302_v37  ;;  %2129 = vrcp.f32 %v431_v25 }
 0x418   :  { %v2122_v38 = vpop.eup %2121 }
 0x419   :  { %v2124_v39 = vpop.eup %2123  ;;  %v562_v40 = vsel %vm105_vm3, %v2122_v38, 0.0 }
 0x41a   :  { %v2126_v41 = vpop.eup %2125  ;;  %563 = vadd.xlane.f32.xlu1 %v562_v40  ;;  %v178_v42 = vmul.f32 %v2124_v39, %v2116_v10  ;;  %v653_v10 = vld [vmem:[%s2839_s4] sm:$0xff] }
 0x41b   :  { %v432_v43 = vsel %vm105_vm3, %v2126_v41, 0.0  ;;  %v2128_v44 = vpop.eup %2127  ;;  %680 = vmatpush.msra.mxu0 %v653_v10 }
 0x41c   :  { %1990 = vmatmul.msk.f32.vlgmr.msrb.gmra.mxu3 %vm105_vm3, %v178_v42  ;;  %v307_v45 = vmul.f32 %v2128_v44, %v2362_v47  ;;  %v2130_v49 = vpop.eup %2129 }
 0x41d   :  { %v437_v50 = vmul.f32 %v2130_v49, %v2381_v6  ;;  %v596_v62 = vpop.permute.xlu2 %595 }
 0x41e   :  { %433 = vadd.xlane.f32.xlu0 %v432_v43 }
 0x424   :  { %1995 = vmatmul.msk.f32.vlgmr.msra.gmra.mxu3 %vm105_vm3, %v307_v45 }
 0x425   :  { %v440_v46 = vpop.permute.xlu1 %439 }
 0x426   :  { %460 = vmatpush.msrb.mxu3 %v440_v46 }
 0x428   :  { %590 = vmatpush.msra.mxu3 %v570_v48 }
 0x42c   :  { %2001 = vmatmul.msk.f32.vlgmr.msrb.gmra.mxu3 %vm105_vm3, %v437_v50  ;;  %v752_v50 = vld [vmem:[%s2839_s4 + $0x38] sm:$0xff] }
 0x42d   :  { %773 = vmatpush.msrb.mxu2 %v752_v50  ;;  %v877_v50 = vld [vmem:[%s2838_s3 + $0x30] sm:$0xff] }
 0x432   :  { %465 = vrot.lane.b32.xlu0 %v2318_v19, %s2233_s24 }
 0x481   :  { %v561_v51 = vpop.xlane.xlu0 %560 }
 0x482   :  { %2131 = vrcp.f32 %v561_v51  ;;  %v751_v51 = vld [vmem:[%s2839_s4 + $0x30] sm:$0xff] }
 0x483   :  { %774 = vmatpush.msrb.mxu2 %v751_v51  ;;  %v876_v51 = vld [vmem:[%s2838_s3 + $0x28] sm:$0xff] }
 0x488   :  { %v2132_v52 = vpop.eup %2131 }
 0x489   :  { %v567_v53 = vmul.f32 %v2132_v52, %v2118_v26  ;;  %v304_v54 = vpop.xlane.xlu0 %303  ;;  %v750_v52 = vld [vmem:[%s2839_s4 + $0x28] sm:$0xff] }
 0x48a   :  { %2133 = vrcp.f32 %v304_v54  ;;  %775 = vmatpush.msrb.mxu2 %v750_v52  ;;  %v875_v52 = vld [vmem:[%s2838_s3 + $0x20] sm:$0xff] }
 0x48b   :  { %2007 = vmatmul.msk.f32.vlgmr.msra.gmra.mxu3 %vm105_vm3, %v567_v53  ;;  %v749_v53 = vld [vmem:[%s2839_s4 + $0x20] sm:$0xff] }
 0x48c   :  { %776 = vmatpush.msrb.mxu2 %v749_v53 }
 0x48d   :  { %v564_v59 = vpop.xlane.xlu1 %563 }
 0x490   :  { %v2134_v47 = vpop.eup %2133 }
 0x491   :  { %v308_v55 = vmul.f32 %v2134_v47, %v2120_v36  ;;  %v434_v56 = vpop.xlane.xlu0 %433 }
 0x492   :  { %2135 = vrcp.f32 %v434_v56 }
 0x493   :  { %1996 = vmatmul.msk.f32.vlgmr.msrb.gmra.mxu1 %vm105_vm3, %v308_v55  ;;  %2137 = vrcp.f32 %v564_v59 }
 0x494   :  { %2139 = vrcp.f32 %v2237_v34 }
 0x498   :  { %v2136_v60 = vpop.eup %2135 }
 0x499   :  { %v438_v61 = vmul.f32 %v2136_v60, %v2126_v41  ;;  %v2138_v0 = vpop.eup %2137 }
 0x49a   :  { %v568_v1 = vmul.f32 %v2138_v0, %v2122_v38  ;;  %v2140_v35 = vpop.eup %2139 }
 0x49b   :  { %v699_v36 = vmul.f32 32.0, %v2140_v35  ;;  %vm703_vm6 = vweird.f32 %v2140_v35 }
 0x49d   :  { %v700_v37 = vsub.f32 1.0, %v699_v36 }
 0x49f   :  { %v228_v57 = vpop.f32.mrf.mxu3  ;;  %v701_v38 = vmul.f32 %v2140_v35, %v700_v37 }
 0x4a1   :  { %v702_v39 = vadd.f32 %v2140_v35, %v701_v38 }
 0x4a3   :  { %v2445_v40 = vsel %vm703_vm6, %v2140_v35, %v702_v39 }
 0x4a4   :  { %v466_v19 = vpop.permute.xlu0 %465 }
 0x4a5   :  { %486 = vmatpush.msra.mxu1 %v466_v19  ;;  %v789_v19 = vld [vmem:[%s2839_s4 + $0x58] sm:$0xff] }
 0x4a6   :  { %2002 = vmatmul.msk.f32.vlgmr.msra.gmra.mxu1 %vm105_vm3, %v438_v61  ;;  %810 = vmatpush.msrb.mxu3 %v789_v19  ;;  %v2094_v19 = vld [vmem:[%s2840_s5 + $0x7] ss:$0 sm:$0xff] }
 0x4a7   :  { %v332_v63 = vpop.f32.mrf.mxu3  ;;  %616 = vmatpush.msrb.mxu1 %v596_v62 }
 0x4a8   :  { %623 = vrot.lane.b32.xlu2 %v332_v63, %s2234_s25  ;;  %v2090_v63 = vld [vmem:[%s2840_s5 + $0x5] ss:$0 sm:$0xff] }
 0x4ae   :  { %2008 = vmatmul.msk.f32.vlgmr.msrb.gmra.mxu1 %vm105_vm3, %v568_v1 }
 0x4af   :  { %v462_v2 = vpop.f32.mrf.mxu3 }
 0x4b0   :  { %631 = vrot.lane.b32.xlu2 %v462_v2, %s2235_s26 }
 0x502   :  { %v624_v12 = vpop.permute.xlu2 %623 }
 0x503   :  { %v645_v15 = vsel %vm105_vm3, %v2376_v58, %v624_v12  ;;  %v2089_v58 = vld [vmem:[%s2840_s5 + $0x2] ss:$0 sm:$0xff] }
 0x50a   :  { %v632_v13 = vpop.permute.xlu2 %631 }
 0x50b   :  { %v648_v16 = vsel %vm647_vm4, %v645_v15, %v632_v13 }
 0x50e   :  { %v592_v3 = vpop.f32.mrf.mxu3 }
 0x50f   :  { %639 = vrot.lane.b32.xlu0 %v592_v3, %s2236_s27 }
 0x510   :  { %v358_v4 = vpop.f32.mrf.mxu1 }
 0x511   :  { %625 = vrot.lane.b32.xlu2 %v358_v4, %s2234_s25  ;;  %v2091_v4 = vld [vmem:[%s2840_s5 + $0x6] ss:$0 sm:$0xff] }
 0x523   :  { %v488_v5 = vpop.f32.mrf.mxu1 }
 0x524   :  { %633 = vrot.lane.b32.xlu0 %v488_v5, %s2235_s26 }
 0x52b   :  { %v618_v6 = vpop.f32.mrf.mxu1 }
 0x52c   :  { %641 = vrot.lane.b32.xlu2 %v618_v6, %s2236_s27 }
 0x56b   :  { %v626_v21 = vpop.permute.xlu2 %625 }
 0x56c   :  { %v646_v22 = vsel %vm105_vm3, %v228_v57, %v626_v21 }
 0x581   :  { %v640_v18 = vpop.permute.xlu0 %639 }
 0x582   :  { %v651_v20 = vsel %vm650_vm5, %v648_v16, %v640_v18 }
 0x583   :  { %2009 = vmatmul.msk.f32.vlgmr.msra.gmra.mxu0 %vm72_vm2, %v651_v20 }
 0x586   :  { %v642_v24 = vpop.permute.xlu2 %641 }
 0x596   :  { %v634_v23 = vpop.permute.xlu0 %633 }
 0x597   :  { %v649_v25 = vsel %vm647_vm4, %v646_v22, %v634_v23  ;;  %v788_v22 = vld [vmem:[%s2839_s4 + $0x50] sm:$0xff]  ;;  %v787_v23 = vld [vmem:[%s2839_s4 + $0x48] sm:$0xff] }
 0x598   :  { %v652_v26 = vsel %vm650_vm5, %v649_v25, %v642_v24  ;;  %811 = vmatpush.msrb.mxu3 %v788_v22  ;;  %v786_v24 = vld [vmem:[%s2839_s4 + $0x40] sm:$0xff] }
 0x599   :  { %2010 = vmatmul.msk.f32.gmra.mxu0 %vm72_vm2, %v652_v26  ;;  %v2092_v25 = vld [vmem:[%s2840_s5 + $0x3] ss:$0 sm:$0xff] }
 0x59a   :  { %812 = vmatpush.msrb.mxu3 %v787_v23 }
 0x59c   :  { %813 = vmatpush.msrb.mxu3 %v786_v24 }
 0x600   :  { %v682_v27 = vpop.f32.mrf.mxu0 }
 0x601   :  { %v683_v28 = vadd.f32 %v2089_v58, %v682_v27 }
 0x603   :  { %v688_v29 = vadd.f32 %v683_v28, %v2301_v11 }
 0x605   :  { %v692_v17 = vsel %vm72_vm2, %v688_v29, 0.0 }
 0x606   :  { %693 = vadd.xlane.f32.xlu0 %v692_v17 }
 0x616   :  { %v685_v30 = vpop.f32.mrf.mxu0 }
 0x617   :  { %v686_v31 = vadd.f32 %v2089_v58, %v685_v30  ;;  %v2093_v30 = vld [vmem:[%s2840_s5 + $0x4] ss:$0 sm:$0xff] }
 0x619   :  { %v689_v32 = vadd.f32 %v686_v31, %v2305_v14 }
 0x61b   :  { %v695_v33 = vsel %vm72_vm2, %v689_v32, 0.0 }
 0x61c   :  { %696 = vadd.xlane.f32.xlu1 %v695_v33 }
 0x679   :  { %v694_v11 = vpop.xlane.xlu0 %693 }
 0x67a   :  { %v705_v41 = vmul.f32 %v2445_v40, %v694_v11 }
 0x67c   :  { %v707_v42 = vsub.f32 %v688_v29, %v705_v41 }
 0x67e   :  { %v709_v43 = vmul.f32 %v707_v42, %v707_v42 }
 0x680   :  { %v711_v14 = vsel %vm72_vm2, %v709_v43, 0.0 }
 0x681   :  { %712 = vadd.xlane.f32.xlu2 %v711_v14 }
 0x68f   :  { %v697_v44 = vpop.xlane.xlu1 %696 }
 0x690   :  { %v706_v45 = vmul.f32 %v2445_v40, %v697_v44 }
 0x692   :  { %v708_v46 = vsub.f32 %v689_v32, %v706_v45 }
 0x694   :  { %v710_v48 = vmul.f32 %v708_v46, %v708_v46 }
 0x696   :  { %v714_v49 = vsel %vm72_vm2, %v710_v48, 0.0 }
 0x697   :  { %715 = vadd.xlane.f32.xlu1 %v714_v49  ;;  %v878_v49 = vld [vmem:[%s2838_s3 + $0x38] sm:$0xff] }
 0x698   :  { %899 = vmatpush.msra.mxu1 %v878_v49 }
 0x69a   :  { %900 = vmatpush.msra.mxu1 %v877_v50 }
 0x69c   :  { %901 = vmatpush.msra.mxu1 %v876_v51 }
 0x69e   :  { %902 = vmatpush.msra.mxu1 %v875_v52 }
 0x6f4   :  { %v713_v54 = vpop.xlane.xlu2 %712 }
 0x6f5   :  { %v717_v47 = vmul.f32 %v713_v54, %v2445_v40 }
 0x6f7   :  { %v719_v55 = vadd.f32 1e-05, %v717_v47 }
 0x6f9   :  { %2141 = vrsqrt.f32 %v719_v55  ;;  %vm727_vm8 = vweird.f32 %v719_v55 }
 0x6ff   :  { %v2142_v56 = vpop.eup %2141 }
 0x700   :  { %v722_v57 = vmul.f32 %v2142_v56, %v719_v55  ;;  %vm728_vm7 = vweird.f32 %v2142_v56 }
 0x701   :  { %vm729_vm9 = vmor %vm727_vm8, %vm728_vm7 }
 0x702   :  { %v723_v59 = vmul.f32 %v2142_v56, %v722_v57 }
 0x704   :  { %v724_v60 = vmul.f32 0.5, %v723_v59 }
 0x706   :  { %v725_v61 = vsub.f32 1.5, %v724_v60 }
 0x708   :  { %v726_v62 = vmul.f32 %v2142_v56, %v725_v61 }
 0x70a   :  { %v730_v0 = vsel %vm729_vm9, %v2142_v56, %v726_v62  ;;  %v716_v1 = vpop.xlane.xlu1 %715 }
 0x70b   :  { %v741_v2 = vmul.f32 %v730_v0, %v707_v42  ;;  %v718_v3 = vmul.f32 %v716_v1, %v2445_v40 }
 0x70d   :  { %v744_v5 = vmul.f32 %v2090_v63, %v741_v2  ;;  %v720_v6 = vadd.f32 1e-05, %v718_v3  ;;  %v2095_v2 = vld [vmem:[%s2840_s5 + $0x8] ss:$0 sm:$0xff] }
 0x70f   :  { %2143 = vrsqrt.f32 %v720_v6  ;;  %v747_v7 = vadd.f32 %v2091_v4, %v744_v5  ;;  %vm737_vm11 = vweird.f32 %v720_v6 }
 0x711   :  { %2011 = vmatmul.msk.f32.vlgmr.msrb.gmra.mxu2 %vm72_vm2, %v747_v7 }
 0x715   :  { %v2144_v8 = vpop.eup %2143 }
 0x716   :  { %v732_v9 = vmul.f32 %v2144_v8, %v720_v6  ;;  %vm738_vm10 = vweird.f32 %v2144_v8 }
 0x717   :  { %vm739_vm12 = vmor %vm737_vm11, %vm738_vm10 }
 0x718   :  { %v733_v10 = vmul.f32 %v2144_v8, %v732_v9 }
 0x71a   :  { %v734_v12 = vmul.f32 0.5, %v733_v10 }
 0x71c   :  { %v735_v13 = vsub.f32 1.5, %v734_v12 }
 0x71e   :  { %v736_v15 = vmul.f32 %v2144_v8, %v735_v13 }
 0x720   :  { %v740_v16 = vsel %vm739_vm12, %v2144_v8, %v736_v15 }
 0x721   :  { %v742_v18 = vmul.f32 %v740_v16, %v708_v46 }
 0x723   :  { %v745_v20 = vmul.f32 %v2090_v63, %v742_v18 }
 0x725   :  { %v748_v21 = vadd.f32 %v2091_v4, %v745_v20  ;;  %v2096_v20 = vld [vmem:[%s2840_s5 + $0x9] ss:$0 sm:$0xff] }
 0x727   :  { %2012 = vmatmul.msk.f32.gmra.mxu2 %vm72_vm2, %v748_v21 }
 0x794   :  { %v778_v26 = vpop.f32.mrf.mxu2 }
 0x795   :  { %v779_v58 = vadd.f32 %v2092_v25, %v778_v26 }
 0x797   :  { %v784_v27 = vmax.f32 %v779_v58, 0.0 }
 0x799   :  { %2013 = vmatmul.msk.f32.vlgmr.msrb.gmra.mxu3 %vm72_vm2, %v784_v27 }
 0x7aa   :  { %v781_v28 = vpop.f32.mrf.mxu2 }
 0x7ab   :  { %v782_v29 = vadd.f32 %v2092_v25, %v781_v28 }
 0x7ad   :  { %v785_v17 = vmax.f32 %v782_v29, 0.0 }
 0x7af   :  { %2014 = vmatmul.msk.f32.gmra.mxu3 %vm72_vm2, %v785_v17 }
 0x81c   :  { %v815_v31 = vpop.f32.mrf.mxu3 }
 0x81d   :  { %v816_v32 = vadd.f32 %v2093_v30, %v815_v31 }
 0x81f   :  { %v821_v33 = vadd.f32 %v816_v32, %v747_v7 }
 0x821   :  { %v825_v34 = vsel %vm72_vm2, %v821_v33, 0.0 }
 0x822   :  { %826 = vadd.xlane.f32.xlu1 %v825_v34 }
 0x832   :  { %v818_v35 = vpop.f32.mrf.mxu3 }
 0x833   :  { %v819_v36 = vadd.f32 %v2093_v30, %v818_v35 }
 0x835   :  { %v822_v37 = vadd.f32 %v819_v36, %v748_v21 }
 0x837   :  { %v828_v38 = vsel %vm72_vm2, %v822_v37, 0.0 }
 0x838   :  { %829 = vadd.xlane.f32.xlu1 %v828_v38 }
 0x895   :  { %v827_v39 = vpop.xlane.xlu1 %826 }
 0x896   :  { %v831_v11 = vmul.f32 %v827_v39, %v2445_v40 }
 0x898   :  { %v833_v41 = vsub.f32 %v821_v33, %v831_v11 }
 0x89a   :  { %v835_v42 = vmul.f32 %v833_v41, %v833_v41 }
 0x89c   :  { %v837_v43 = vsel %vm72_vm2, %v835_v42, 0.0 }
 0x89d   :  { %838 = vadd.xlane.f32.xlu1 %v837_v43 }
 0x8ab   :  { %v830_v14 = vpop.xlane.xlu1 %829 }
 0x8ac   :  { %v832_v44 = vmul.f32 %v830_v14, %v2445_v40 }
 0x8ae   :  { %v834_v45 = vsub.f32 %v822_v37, %v832_v44 }
 0x8b0   :  { %v836_v46 = vmul.f32 %v834_v45, %v834_v45 }
 0x8b2   :  { %v840_v48 = vsel %vm72_vm2, %v836_v46, 0.0 }
 0x8b3   :  { %841 = vadd.xlane.f32.xlu0 %v840_v48 }
 0x910   :  { %v839_v53 = vpop.xlane.xlu1 %838 }
 0x911   :  { %v843_v54 = vmul.f32 %v839_v53, %v2445_v40 }
 0x913   :  { %v845_v47 = vadd.f32 1e-05, %v843_v54 }
 0x915   :  { %2145 = vrsqrt.f32 %v845_v47  ;;  %vm853_vm14 = vweird.f32 %v845_v47 }
 0x91b   :  { %v2146_v55 = vpop.eup %2145 }
 0x91c   :  { %v848_v56 = vmul.f32 %v2146_v55, %v845_v47  ;;  %vm854_vm13 = vweird.f32 %v2146_v55 }
 0x91d   :  { %vm855_vm15 = vmor %vm853_vm14, %vm854_vm13  ;;  %vm1704_vm13 = vcmask 1040384  }
 0x91e   :  { %v849_v57 = vmul.f32 %v2146_v55, %v848_v56 }
 0x920   :  { %v850_v59 = vmul.f32 0.5, %v849_v57 }
 0x922   :  { %v851_v60 = vsub.f32 1.5, %v850_v59 }
 0x924   :  { %v852_v61 = vmul.f32 %v2146_v55, %v851_v60 }
 0x926   :  { %v856_v62 = vsel %vm855_vm15, %v2146_v55, %v852_v61  ;;  %v842_v63 = vpop.xlane.xlu0 %841 }
 0x927   :  { %v867_v0 = vmul.f32 %v856_v62, %v833_v41  ;;  %v844_v1 = vmul.f32 %v842_v63, %v2445_v40 }
 0x929   :  { %v870_v3 = vmul.f32 %v2094_v19, %v867_v0  ;;  %v846_v4 = vadd.f32 1e-05, %v844_v1 }
 0x92b   :  { %2147 = vrsqrt.f32 %v846_v4  ;;  %v2519_v5 = vadd.f32 %v2095_v2, %v870_v3  ;;  %vm863_vm1 = vweird.f32 %v846_v4 }
 0x92d   :  { %2015 = vmatmul.msk.f32.vlgmr.msra.gmra.mxu1 %vm72_vm2, %v2519_v5 }
 0x931   :  { %v2148_v6 = vpop.eup %2147 }
 0x932   :  { %v858_v7 = vmul.f32 %v2148_v6, %v846_v4  ;;  %vm864_vm0 = vweird.f32 %v2148_v6 }
 0x933   :  { %vm865_vm6 = vmor %vm863_vm1, %vm864_vm0 }
 0x934   :  { %v859_v8 = vmul.f32 %v2148_v6, %v858_v7 }
 0x936   :  { %v860_v9 = vmul.f32 0.5, %v859_v8 }
 0x938   :  { %v861_v10 = vsub.f32 1.5, %v860_v9 }
 0x93a   :  { %v862_v12 = vmul.f32 %v2148_v6, %v861_v10 }
 0x93c   :  { %v866_v13 = vsel %vm865_vm6, %v2148_v6, %v862_v12  ;;  %vm1719_vm6 = vcmask 1046528  }
 0x93d   :  { %v868_v15 = vmul.f32 %v866_v13, %v834_v45 }
 0x93f   :  { %v871_v16 = vmul.f32 %v2094_v19, %v868_v15 }
 0x941   :  { %v2523_v18 = vadd.f32 %v2095_v2, %v871_v16 }
 0x943   :  { %2016 = vmatmul.msk.f32.gmra.mxu1 %vm72_vm2, %v2523_v18 }
 0x9aa   :  { %v904_v21 = vpop.f32.mrf.mxu1 }
 0x9ab   :  { %v2530_v22 = vadd.f32 %v2096_v20, %v904_v21 }
 0x9ad   :  { %1040 = vrot.lane.b32.xlu0 %v2530_v22, %s2223_s1  ;;  %911 = vrot.lane.b32.xlu1 %v2530_v22, %s2224_s15 }
 0x9b5   :  { %1038 = vrot.lane.b32.xlu1 %v2530_v22, %s2226_s17 }
 0x9c0   :  { %v907_v23 = vpop.f32.mrf.mxu1 }
 0x9c1   :  { %v2538_v24 = vadd.f32 %v2096_v20, %v907_v23 }
 0x9c3   :  { %938 = vrot.lane.b32.xlu2 %v2538_v24, %s2224_s15  ;;  %1068 = vrot.lane.b32.xlu0 %v2538_v24, %s2223_s1  ;;  %v2077_v51 = vpack.i.bf16 %v2538_v24, %v2530_v22  ;;  %s1969_s1 = sshll.u32 %s2238_s10, 4  ;;  %s1970_s1 = int_to_ptr.vmem [resolvable:$true] %s1969_s1 }
 0x9c4   :  { %1066 = vrot.lane.b32.xlu1 %v2538_v24, %s2226_s17  ;;  %s1971_s17 = sshll.u32 %s2841_s6, 4  ;;  %s1972_s17 = int_to_ptr.hbm [resolvable:$true] %s1971_s17 }
 0x9cb   :  { %1170 = vrot.lane.b32.xlu2 %v2530_v22, %s2227_s18  ;;  %1168 = vrot.lane.b32.xlu0 %v2530_v22, %s2228_s19 }
 0x9cc   :  { %1300 = vrot.lane.b32.xlu1 %v2530_v22, %s2230_s21 }
 0x9d3   :  { %1198 = vrot.lane.b32.xlu2 %v2538_v24, %s2227_s18  ;;  %1196 = vrot.lane.b32.xlu0 %v2538_v24, %s2228_s19 }
 0x9d4   :  { %1328 = vrot.lane.b32.xlu1 %v2538_v24, %s2230_s21 }
 0x9db   :  { %1298 = vrot.lane.b32.xlu2 %v2530_v22, %s2229_s20  ;;  %1326 = vrot.lane.b32.xlu0 %v2538_v24, %s2229_s20 }
 0xa1d   :  { %v939_v25 = vpop.permute.xlu2 %938 }
 0xa1e   :  { %2019 = vmatpush.xpose.msk.msra.mxu2 %vm105_vm3, %v939_v25 }
 0xa1f   :  { %v1041_v26 = vpop.permute.xlu0 %1040  ;;  %v912_v58 = vpop.permute.xlu1 %911 }
 0xa20   :  { %2017 = vmatpush.xpose.msk.msrb.mxu0 %vm105_vm3, %v912_v58 }
 0xa21   :  { %2020 = vmatmul.msk.f32.vlgmr.msra.gmra.mxu2 %vm105_vm3, %v2538_v24 }
 0xa23   :  { %2018 = vmatmul.msk.f32.vlgmr.msrb.gmra.mxu0 %vm105_vm3, %v2530_v22 }
 0xa24   :  { %2023 = vmatpush.xpose.msk.msra.mxu0 %vm105_vm3, %v1041_v26 }
 0xa25   :  { %v1171_v27 = vpop.permute.xlu2 %1170 }
 0xa27   :  { %v1039_v28 = vpop.permute.xlu1 %1038 }
 0xa28   :  { %2029 = vmatpush.xpose.msk.msrb.mxu0 %vm105_vm3, %v1171_v27 }
 0xa2b   :  { %2024 = vmatmul.msk.f32.vlgmr.msra.gmra.mxu0 %vm105_vm3, %v1039_v28 }
 0xa2d   :  { %v1199_v17 = vpop.permute.xlu2 %1198 }
 0xa35   :  { %v1069_v29 = vpop.permute.xlu0 %1068  ;;  %v1299_v33 = vpop.permute.xlu2 %1298 }
 0xa36   :  { %v1067_v30 = vpop.permute.xlu1 %1066  ;;  %2025 = vmatpush.xpose.msk.msrb.mxu2 %vm105_vm3, %v1069_v29 }
 0xa39   :  { %2026 = vmatmul.msk.f32.vlgmr.msrb.gmra.mxu2 %vm105_vm3, %v1067_v30 }
 0xa3a   :  { %2031 = vmatpush.xpose.msk.msra.mxu2 %vm105_vm3, %v1199_v17 }
 0xa3d   :  { %v1169_v31 = vpop.permute.xlu0 %1168 }
 0xa3e   :  { %v1301_v32 = vpop.permute.xlu1 %1300  ;;  %2030 = vmatmul.msk.f32.vlgmr.msrb.gmra.mxu0 %vm105_vm3, %v1169_v31 }
 0xa3f   :  { %2035 = vmatpush.xpose.msk.msra.mxu0 %vm105_vm3, %v1301_v32 }
 0xa45   :  { %v1197_v34 = vpop.permute.xlu0 %1196 }
 0xa46   :  { %v1329_v35 = vpop.permute.xlu1 %1328  ;;  %2032 = vmatmul.msk.f32.vlgmr.msra.gmra.mxu2 %vm105_vm3, %v1197_v34  ;;  %2036 = vmatmul.msk.f32.vlgmr.msra.gmra.mxu0 %vm105_vm3, %v1299_v33 }
 0xa47   :  { %2037 = vmatpush.xpose.msk.msrb.mxu2 %vm105_vm3, %v1329_v35 }
 0xa4d   :  { %v1327_v36 = vpop.permute.xlu0 %1326 }
 0xa4e   :  { %2038 = vmatmul.msk.f32.vlgmr.msrb.gmra.mxu2 %vm105_vm3, %v1327_v36 }
 0xaa0   :  { %v934_v37 = vpop.f32.mrf.mxu0 }
 0xaa1   :  { %v964_v38 = vsel %vm105_vm3, %v934_v37, -inf }
 0xaa2   :  { %965 = vmax.xlane.f32.xlu2 %v964_v38 }
 0xaa4   :  { %v2582_v41 = vpop.f32.mrf.mxu2 }
 0xaa5   :  { %v967_v63 = vsel %vm105_vm3, %v2582_v41, -inf }
 0xaa8   :  { %v1063_v39 = vpop.f32.mrf.mxu0 }
 0xaa9   :  { %v1094_v11 = vsel %vm105_vm3, %v1063_v39, -inf }
 0xaaa   :  { %1095 = vmax.xlane.f32.xlu1 %v1094_v11 }
 0xabb   :  { %v1193_v42 = vpop.f32.mrf.mxu0 }
 0xabc   :  { %v1091_v43 = vpop.f32.mrf.mxu2  ;;  %v1224_v14 = vsel %vm105_vm3, %v1193_v42, -inf }
 0xabd   :  { %1225 = vmax.xlane.f32.xlu2 %v1224_v14  ;;  %v1097_v44 = vsel %vm105_vm3, %v1091_v43, -inf }
 0xabe   :  { %1098 = vmax.xlane.f32.xlu1 %v1097_v44 }
 0xac3   :  { %v1323_v45 = vpop.f32.mrf.mxu0 }
 0xac4   :  { %v1354_v46 = vsel %vm105_vm3, %v1323_v45, -inf }
 0xac5   :  { %1355 = vmax.xlane.f32.xlu2 %v1354_v46 }
 0xac9   :  { %v2587_v48 = vpop.f32.mrf.mxu2 }
 0xaca   :  { %v1227_v3 = vsel %vm105_vm3, %v2587_v48, -inf }
 0xad1   :  { %v2589_v49 = vpop.f32.mrf.mxu2 }
 0xad2   :  { %v1357_v50 = vsel %vm105_vm3, %v2589_v49, -inf }
 0xad3   :  { %1358 = vmax.xlane.f32.xlu1 %v1357_v50 }
 0xaec   :  { %2078 = vrot.lane.b32.xlu1 %v2077_v51, %s2225_s16 }
 0xb15   :  { %v966_v52 = vpop.xlane.xlu2 %965 }
 0xb16   :  { %v970_v53 = vsub.f32 %v934_v37, %v966_v52 }
 0xb18   :  { %v972_v54 = vmul.f32 1.442695, %v970_v53 }
 0xb1a   :  { %2149 = vpow2.f32 %v972_v54 }
 0xb1d   :  { %v1096_v47 = vpop.xlane.xlu1 %1095 }
 0xb1e   :  { %v1100_v55 = vsub.f32 %v1063_v39, %v1096_v47 }
 0xb20   :  { %v2150_v56 = vpop.eup %2149  ;;  %v1102_v57 = vmul.f32 1.442695, %v1100_v55 }
 0xb21   :  { %v976_v59 = vsel %vm105_vm3, %v2150_v56, 0.0 }
 0xb22   :  { %2151 = vpow2.f32 %v1102_v57  ;;  %977 = vadd.xlane.f32.xlu2 %v976_v59 }
 0xb28   :  { %v2152_v60 = vpop.eup %2151 }
 0xb29   :  { %v1106_v61 = vsel %vm105_vm3, %v2152_v60, 0.0 }
 0xb2a   :  { %1107 = vadd.xlane.f32.xlu0 %v1106_v61 }
 0xb30   :  { %v1226_v19 = vpop.xlane.xlu2 %1225 }
 0xb31   :  { %v1230_v62 = vsub.f32 %v1193_v42, %v1226_v19  ;;  %v1099_v10 = vpop.xlane.xlu1 %1098 }
 0xb32   :  { %968 = vmax.xlane.f32.xlu0 %v967_v63  ;;  %v1101_v20 = vsub.f32 %v1091_v43, %v1099_v10 }
 0xb33   :  { %v1232_v0 = vmul.f32 1.442695, %v1230_v62 }
 0xb34   :  { %v1104_v21 = vmul.f32 1.442695, %v1101_v20 }
 0xb35   :  { %2153 = vpow2.f32 %v1232_v0 }
 0xb38   :  { %v1356_v1 = vpop.xlane.xlu2 %1355 }
 0xb39   :  { %v1360_v2 = vsub.f32 %v1323_v45, %v1356_v1 }
 0xb3a   :  { %2083 = vrot.lane.b32.xlu2 %v2077_v51, %s2231_s22  ;;  %1228 = vmax.xlane.f32.xlu0 %v1227_v3 }
 0xb3b   :  { %v1362_v4 = vmul.f32 1.442695, %v1360_v2  ;;  %v2154_v6 = vpop.eup %2153 }
 0xb3c   :  { %v1236_v7 = vsel %vm105_vm3, %v2154_v6, 0.0 }
 0xb3d   :  { %2155 = vpow2.f32 %v1362_v4 }
 0xb3e   :  { %2157 = vpow2.f32 %v1104_v21 }
 0xb42   :  { %1237 = vadd.xlane.f32.xlu0 %v1236_v7 }
 0xb43   :  { %v2604_v8 = vpop.eup %2155 }
 0xb44   :  { %v1366_v9 = vsel %vm105_vm3, %v2604_v8, 0.0  ;;  %v2610_v23 = vpop.eup %2157 }
 0xb45   :  { %v1109_v25 = vsel %vm105_vm3, %v2610_v23, 0.0 }
 0xb46   :  { %v1359_v12 = vpop.xlane.xlu1 %1358 }
 0xb47   :  { %v1361_v46 = vsub.f32 %v2589_v49, %v1359_v12  ;;  %v1461_v12 = vld [vmem:[%s2839_s4 + $0x78] sm:$0xff] }
 0xb48   :  { %1482 = vmatpush.msrb.mxu0 %v1461_v12 }
 0xb4a   :  { %1367 = vadd.xlane.f32.xlu0 %v1366_v9 }
 0xb5e   :  { %1246 = vrot.lane.b32.xlu0 %v2530_v22, %s2233_s24  ;;  %v2079_v13 = vpop.permute.xlu1 %2078 }
 0xb5f   :  { %v2081_v15 = vunpack.i.h.bf16 %v2079_v13  ;;  %v2080_v16 = vunpack.i.l.bf16 %v2079_v13  ;;  %v1460_v13 = vld [vmem:[%s2839_s4 + $0x70] sm:$0xff] }
 0xb60   :  { %1483 = vmatpush.msrb.mxu0 %v1460_v13 }
 0xb61   :  { %1007 = vmatpush.msra.mxu3 %v2080_v16  ;;  %1033 = vmatpush.msrb.mxu1 %v2081_v15  ;;  %v1459_v15 = vld [vmem:[%s2839_s4 + $0x68] sm:$0xff]  ;;  %v1458_v16 = vld [vmem:[%s2839_s4 + $0x60] sm:$0xff] }
 0xb62   :  { %1484 = vmatpush.msrb.mxu0 %v1459_v15 }
 0xb64   :  { %1485 = vmatpush.msrb.mxu0 %v1458_v16 }
 0xb88   :  { %1110 = vadd.xlane.f32.xlu0 %v1109_v25 }
 0xb95   :  { %v978_v26 = vpop.xlane.xlu2 %977 }
 0xb96   :  { %2159 = vrcp.f32 %v978_v26 }
 0xb9c   :  { %v2160_v58 = vpop.eup %2159  ;;  %1272 = vrot.lane.b32.xlu0 %v2538_v24, %s2233_s24 }
 0xb9d   :  { %v984_v27 = vmul.f32 %v2160_v58, %v2150_v56  ;;  %v2084_v28 = vpop.permute.xlu2 %2083  ;;  %v1108_v29 = vpop.xlane.xlu0 %1107 }
 0xb9e   :  { %v2086_v17 = vunpack.i.h.bf16 %v2084_v28  ;;  %v2085_v30 = vunpack.i.l.bf16 %v2084_v28  ;;  %2161 = vrcp.f32 %v1108_v29 }
 0xb9f   :  { %2021 = vmatmul.msk.f32.vlgmr.msra.gmra.mxu3 %vm105_vm3, %v984_v27 }
 0xba0   :  { %1137 = vmatpush.msrb.mxu3 %v2085_v30  ;;  %1163 = vmatpush.msra.mxu1 %v2086_v17 }
 0xba4   :  { %v2162_v31 = vpop.eup %2161  ;;  %1402 = vrot.lane.b32.xlu0 %v2538_v24, %s2232_s23 }
 0xba5   :  { %v1114_v32 = vmul.f32 %v2162_v31, %v2152_v60  ;;  %v969_v33 = vpop.xlane.xlu0 %968 }
 0xba6   :  { %v971_v34 = vsub.f32 %v2582_v41, %v969_v33 }
 0xba7   :  { %2027 = vmatmul.msk.f32.vlgmr.msrb.gmra.mxu3 %vm105_vm3, %v1114_v32  ;;  %v2097_v32 = vld [vmem:[%s2840_s5 + $0xa] ss:$0 sm:$0xff] }
 0xba8   :  { %v974_v35 = vmul.f32 1.442695, %v971_v34 }
 0xbaa   :  { %2163 = vpow2.f32 %v974_v35 }
 0xbad   :  { %v1229_v36 = vpop.xlane.xlu0 %1228 }
 0xbae   :  { %v1231_v37 = vsub.f32 %v2587_v48, %v1229_v36  ;;  %v1364_v48 = vmul.f32 1.442695, %v1361_v46 }
 0xbb0   :  { %v2164_v38 = vpop.eup %2163  ;;  %v1234_v39 = vmul.f32 1.442695, %v1231_v37 }
 0xbb1   :  { %v979_v11 = vsel %vm105_vm3, %v2164_v38, 0.0 }
 0xbb2   :  { %2165 = vpow2.f32 %v1234_v39  ;;  %980 = vadd.xlane.f32.xlu2 %v979_v11 }
 0xbb5   :  { %v1238_v43 = vpop.xlane.xlu0 %1237 }
 0xbb6   :  { %2167 = vrcp.f32 %v1238_v43 }
 0xbb7   :  { %2169 = vpow2.f32 %v1364_v48 }
 0xbb8   :  { %v2166_v42 = vpop.eup %2165 }
 0xbb9   :  { %v1239_v24 = vsel %vm105_vm3, %v2166_v42, 0.0 }
 0xbba   :  { %1240 = vadd.xlane.f32.xlu1 %v1239_v24 }
 0xbbc   :  { %v2168_v14 = vpop.eup %2167 }
 0xbbd   :  { %v1368_v41 = vpop.xlane.xlu0 %1367  ;;  %v1244_v44 = vmul.f32 %v2168_v14, %v2154_v6  ;;  %v2170_v50 = vpop.eup %2169 }
 0xbbe   :  { %v1369_v51 = vsel %vm105_vm3, %v2170_v50, 0.0  ;;  %2171 = vrcp.f32 %v1368_v41 }
 0xbca   :  { %1376 = vrot.lane.b32.xlu2 %v2530_v22, %s2232_s23  ;;  %v2172_v22 = vpop.eup %2171 }
 0xbcb   :  { %v1374_v56 = vmul.f32 %v2172_v22, %v2604_v8 }
 0xbd0   :  { %v1247_v45 = vpop.permute.xlu0 %1246 }
 0xbd1   :  { %1267 = vmatpush.msra.mxu3 %v1247_v45 }
 0xbd2   :  { %2033 = vmatmul.msk.f32.vlgmr.msra.gmra.mxu3 %vm105_vm3, %v1244_v44 }
 0xbf3   :  { %1370 = vadd.xlane.f32.xlu2 %v1369_v51  ;;  %v1548_v51 = vld [vmem:[%s2839_s4 + $0x88] sm:$0xff] }
 0xbfb   :  { %v1111_v53 = vpop.xlane.xlu0 %1110 }
 0xc0e   :  { %v1273_v49 = vpop.permute.xlu0 %1272 }
 0xc16   :  { %v1403_v62 = vpop.permute.xlu0 %1402 }
 0xc22   :  { %v1009_v52 = vpop.f32.mrf.mxu3 }
 0xc25   :  { %v981_v54 = vpop.xlane.xlu2 %980 }
 0xc26   :  { %2173 = vrcp.f32 %v981_v54 }
 0xc27   :  { %2175 = vrcp.f32 %v1111_v53 }
 0xc2a   :  { %v1139_v47 = vpop.f32.mrf.mxu3 }
 0xc2b   :  { %1430 = vrot.lane.b32.xlu0 %v1139_v47, %s2234_s25 }
 0xc2c   :  { %v2174_v55 = vpop.eup %2173 }
 0xc2d   :  { %v985_v57 = vmul.f32 %v2174_v55, %v2164_v38  ;;  %v1377_v59 = vpop.permute.xlu2 %1376  ;;  %v1241_v60 = vpop.xlane.xlu1 %1240 }
 0xc2e   :  { %1397 = vmatpush.msrb.mxu3 %v1377_v59  ;;  %v2176_v61 = vpop.eup %2175  ;;  %2177 = vrcp.f32 %v1241_v60  ;;  %v2098_v60 = vld [vmem:[%s2840_s5 + $0xd] ss:$0 sm:$0xff] }
 0xc2f   :  { %2022 = vmatmul.msk.f32.vlgmr.msrb.gmra.mxu1 %vm105_vm3, %v985_v57  ;;  %2039 = vmatmul.msk.f32.vlgmr.msrb.gmra.mxu3 %vm105_vm3, %v1374_v56  ;;  %v1115_v19 = vmul.f32 %v2176_v61, %v2610_v23 }
 0xc30   :  { %1293 = vmatpush.msrb.mxu1 %v1273_v49 }
 0xc34   :  { %v2178_v63 = vpop.eup %2177 }
 0xc35   :  { %v1245_v0 = vmul.f32 %v2178_v63, %v2166_v42 }
 0xc37   :  { %2028 = vmatmul.msk.f32.vlgmr.msra.gmra.mxu1 %vm105_vm3, %v1115_v19 }
 0xc38   :  { %1423 = vmatpush.msra.mxu1 %v1403_v62  ;;  %v2099_v62 = vld [vmem:[%s2840_s5 + $0xe] ss:$0 sm:$0xff] }
 0xc3f   :  { %2034 = vmatmul.msk.f32.vlgmr.msrb.gmra.mxu1 %vm105_vm3, %v1245_v0 }
 0xc55   :  { %v1269_v1 = vpop.f32.mrf.mxu3 }
 0xc56   :  { %1438 = vrot.lane.b32.xlu1 %v1269_v1, %s2235_s26  ;;  %v1587_v1 = vld [vmem:[%s2839_s4 + $0xb8] sm:$0xff] }
 0xc57   :  { %1608 = vmatpush.msra.mxu3 %v1587_v1 }
 0xc66   :  { %v1371_v2 = vpop.xlane.xlu2 %1370 }
 0xc67   :  { %2179 = vrcp.f32 %v1371_v2 }
 0xc6d   :  { %v2180_v3 = vpop.eup %2179 }
 0xc6e   :  { %v1375_v4 = vmul.f32 %v2180_v3, %v2170_v50  ;;  %v1549_v50 = vld [vmem:[%s2839_s4 + $0x90] sm:$0xff] }
 0xc70   :  { %2040 = vmatmul.msk.f32.vlgmr.msra.gmra.mxu1 %vm105_vm3, %v1375_v4 }
 0xc9d   :  { %v1431_v20 = vpop.permute.xlu0 %1430 }
 0xc9e   :  { %v1452_v23 = vsel %vm105_vm3, %v1009_v52, %v1431_v20  ;;  %v1547_v52 = vld [vmem:[%s2839_s4 + $0x80] sm:$0xff] }
 0xcac   :  { %v1035_v6 = vpop.f32.mrf.mxu1 }
 0xcb2   :  { %v1399_v7 = vpop.f32.mrf.mxu3 }
 0xcb3   :  { %1446 = vrot.lane.b32.xlu0 %v1399_v7, %s2236_s27 }
 0xcb4   :  { %v1165_v8 = vpop.f32.mrf.mxu1 }
 0xcbb   :  { %1432 = vrot.lane.b32.xlu0 %v1165_v8, %s2234_s25 }
 0xcbc   :  { %v1295_v9 = vpop.f32.mrf.mxu1 }
 0xcbd   :  { %1440 = vrot.lane.b32.xlu2 %v1295_v9, %s2235_s26 }
 0xcc8   :  { %v1439_v21 = vpop.permute.xlu1 %1438 }
 0xcc9   :  { %v1454_v25 = vsel %vm647_vm4, %v1452_v23, %v1439_v21  ;;  %v1586_v21 = vld [vmem:[%s2839_s4 + $0xb0] sm:$0xff]  ;;  %v1585_v23 = vld [vmem:[%s2839_s4 + $0xa8] sm:$0xff] }
 0xcca   :  { %1609 = vmatpush.msra.mxu3 %v1586_v21 }
 0xccc   :  { %1610 = vmatpush.msra.mxu3 %v1585_v23 }
 0xced   :  { %v1425_v10 = vpop.f32.mrf.mxu1 }
 0xcee   :  { %1448 = vrot.lane.b32.xlu0 %v1425_v10, %s2236_s27 }
 0xd17   :  { %v1441_v29 = vpop.permute.xlu2 %1440 }
 0xd25   :  { %v1447_v26 = vpop.permute.xlu0 %1446 }
 0xd26   :  { %v1456_v58 = vsel %vm650_vm5, %v1454_v25, %v1447_v26  ;;  %v1584_v25 = vld [vmem:[%s2839_s4 + $0xa0] sm:$0xff]  ;;  %v2100_v26 = vld [vmem:[%s2840_s5 + $0xb] ss:$0 sm:$0xff] }
 0xd27   :  { %2041 = vmatmul.msk.f32.vlgmr.msrb.gmra.mxu0 %vm72_vm2, %v1456_v58  ;;  %1611 = vmatpush.msra.mxu3 %v1584_v25 }
 0xd2d   :  { %v1433_v27 = vpop.permute.xlu0 %1432 }
 0xd2e   :  { %v1453_v28 = vsel %vm105_vm3, %v1035_v6, %v1433_v27 }
 0xd2f   :  { %v1455_v30 = vsel %vm647_vm4, %v1453_v28, %v1441_v29 }
 0xd60   :  { %v1449_v17 = vpop.permute.xlu0 %1448 }
 0xd61   :  { %v1457_v31 = vsel %vm650_vm5, %v1455_v30, %v1449_v17 }
 0xd62   :  { %2042 = vmatmul.msk.f32.gmra.mxu0 %vm72_vm2, %v1457_v31  ;;  %v2101_v31 = vld [vmem:[%s2840_s5 + $0xc] ss:$0 sm:$0xff] }
 0xda4   :  { %v1487_v33 = vpop.f32.mrf.mxu0 }
 0xda5   :  { %v1488_v34 = vadd.f32 %v2097_v32, %v1487_v33 }
 0xda7   :  { %v1493_v35 = vadd.f32 %v1488_v34, %v2519_v5 }
 0xda9   :  { %v1497_v36 = vsel %vm72_vm2, %v1493_v35, 0.0 }
 0xdaa   :  { %1498 = vadd.xlane.f32.xlu1 %v1497_v36 }
 0xddf   :  { %v1490_v37 = vpop.f32.mrf.mxu0 }
 0xde0   :  { %v1491_v38 = vadd.f32 %v2097_v32, %v1490_v37 }
 0xde2   :  { %v1494_v39 = vadd.f32 %v1491_v38, %v2523_v18  ;;  %v1550_v18 = vld [vmem:[%s2839_s4 + $0x98] sm:$0xff] }
 0xde3   :  { %1571 = vmatpush.msra.mxu2 %v1550_v18  ;;  %v1738_v18 = vld [vmem:[%s2839_s4 + $0xf0] sm:$0xff] }
 0xde4   :  { %v1500_v11 = vsel %vm72_vm2, %v1494_v39, 0.0 }
 0xde5   :  { %1501 = vadd.xlane.f32.xlu0 %v1500_v11  ;;  %1572 = vmatpush.msra.mxu2 %v1549_v50  ;;  %v1737_v50 = vld [vmem:[%s2839_s4 + $0xe8] sm:$0xff] }
 0xde7   :  { %1573 = vmatpush.msra.mxu2 %v1548_v51  ;;  %v1735_v51 = vld [vmem:[%s2839_s4 + $0xd8] sm:$0xff] }
 0xde8   :  { %1785 = vmatpush.msra.mxu0 %v1735_v51 }
 0xde9   :  { %1574 = vmatpush.msra.mxu2 %v1547_v52  ;;  %v1736_v52 = vld [vmem:[%s2839_s4 + $0xe0] sm:$0xff] }
 0xe1d   :  { %v1499_v42 = vpop.xlane.xlu1 %1498 }
 0xe1e   :  { %v1503_v24 = vmul.f32 %v1499_v42, %v2445_v40 }
 0xe20   :  { %v1505_v43 = vsub.f32 %v1493_v35, %v1503_v24 }
 0xe22   :  { %v1507_v41 = vmul.f32 %v1505_v43, %v1505_v43 }
 0xe24   :  { %v1509_v14 = vsel %vm72_vm2, %v1507_v41, 0.0 }
 0xe25   :  { %1510 = vadd.xlane.f32.xlu2 %v1509_v14 }
 0xe58   :  { %v1502_v44 = vpop.xlane.xlu0 %1501 }
 0xe59   :  { %v1504_v5 = vmul.f32 %v1502_v44, %v2445_v40 }
 0xe5b   :  { %v1506_v45 = vsub.f32 %v1494_v39, %v1504_v5 }
 0xe5d   :  { %v1508_v46 = vmul.f32 %v1506_v45, %v1506_v45 }
 0xe5f   :  { %v1512_v48 = vsel %vm72_vm2, %v1508_v46, 0.0 }
 0xe60   :  { %1513 = vadd.xlane.f32.xlu1 %v1512_v48  ;;  %v1739_v48 = vld [vmem:[%s2839_s4 + $0xf8] sm:$0xff] }
 0xe61   :  { %1756 = vmatpush.msrb.mxu1 %v1739_v48  ;;  %v2104_v48 = vld [vmem:[%s2840_s5 + $0x11] ss:$0 sm:$0xff] }
 0xe63   :  { %1757 = vmatpush.msrb.mxu1 %v1738_v18 }
 0xe65   :  { %1758 = vmatpush.msrb.mxu1 %v1737_v50 }
 0xe67   :  { %1759 = vmatpush.msrb.mxu1 %v1736_v52 }
 0xe98   :  { %v1511_v53 = vpop.xlane.xlu2 %1510 }
 0xe99   :  { %v1515_v54 = vmul.f32 %v1511_v53, %v2445_v40  ;;  %v1734_v53 = vld [vmem:[%s2839_s4 + $0xd0] sm:$0xff] }
 0xe9a   :  { %1786 = vmatpush.msra.mxu0 %v1734_v53 }
 0xe9b   :  { %v1517_v22 = vadd.f32 1e-05, %v1515_v54  ;;  %v1733_v54 = vld [vmem:[%s2839_s4 + $0xc8] sm:$0xff] }
 0xe9c   :  { %1787 = vmatpush.msra.mxu0 %v1733_v54 }
 0xe9d   :  { %2181 = vrsqrt.f32 %v1517_v22  ;;  %vm1525_vm4 = vweird.f32 %v1517_v22 }
 0xea3   :  { %v2182_v47 = vpop.eup %2181 }
 0xea4   :  { %v1520_v55 = vmul.f32 %v2182_v47, %v1517_v22  ;;  %vm1526_vm3 = vweird.f32 %v2182_v47  ;;  %v1732_v22 = vld [vmem:[%s2839_s4 + $0xc0] sm:$0xff] }
 0xea5   :  { %vm1527_vm5 = vmor %vm1525_vm4, %vm1526_vm3  ;;  %1788 = vmatpush.msra.mxu0 %v1732_v22 }
 0xea6   :  { %v1521_v56 = vmul.f32 %v2182_v47, %v1520_v55 }
 0xea8   :  { %v1522_v49 = vmul.f32 0.5, %v1521_v56 }
 0xeaa   :  { %v1523_v57 = vsub.f32 1.5, %v1522_v49 }
 0xeac   :  { %v1524_v59 = vmul.f32 %v2182_v47, %v1523_v57 }
 0xeae   :  { %v1528_v61 = vsel %vm1527_vm5, %v2182_v47, %v1524_v59 }
 0xeaf   :  { %v1539_v19 = vmul.f32 %v1528_v61, %v1505_v43  ;;  %v1673_v61 = vlaneseq }
 0xeb1   :  { %v1542_v63 = vmul.f32 %v2098_v60, %v1539_v19 }
 0xeb3   :  { %v1545_v0 = vadd.f32 %v2099_v62, %v1542_v63  ;;  %v2102_v63 = vld [vmem:[%s2840_s5 + $0xf] ss:$0 sm:$0xff] }
 0xeb5   :  { %2043 = vmatmul.msk.f32.vlgmr.msra.gmra.mxu2 %vm72_vm2, %v1545_v0 }
 0xed3   :  { %v1514_v2 = vpop.xlane.xlu1 %1513 }
 0xed4   :  { %v1516_v3 = vmul.f32 %v1514_v2, %v2445_v40 }
 0xed6   :  { %v1518_v4 = vadd.f32 1e-05, %v1516_v3  ;;  %v2103_v3 = vld [vmem:[%s2840_s5 + $0x10] ss:$0 sm:$0xff] }
 0xed8   :  { %2183 = vrsqrt.f32 %v1518_v4  ;;  %vm1535_vm8 = vweird.f32 %v1518_v4 }
 0xede   :  { %v2184_v6 = vpop.eup %2183 }
 0xedf   :  { %v1530_v7 = vmul.f32 %v2184_v6, %v1518_v4  ;;  %vm1536_vm7 = vweird.f32 %v2184_v6 }
 0xee0   :  { %vm1537_vm9 = vmor %vm1535_vm8, %vm1536_vm7  ;;  %vm1934_vm7 = vcmask 1041409   ;;  %vm1962_vm8 = vcmask 9216  }
 0xee1   :  { %v1531_v8 = vmul.f32 %v2184_v6, %v1530_v7 }
 0xee3   :  { %v1532_v9 = vmul.f32 0.5, %v1531_v8 }
 0xee5   :  { %v1533_v10 = vsub.f32 1.5, %v1532_v9 }
 0xee7   :  { %v1534_v12 = vmul.f32 %v2184_v6, %v1533_v10 }
 0xee9   :  { %v1538_v13 = vsel %vm1537_vm9, %v2184_v6, %v1534_v12  ;;  %v1799_v12 = vld [vmem:[%s2839_s4 + $0x118] sm:$0xff] }
 0xeea   :  { %v1540_v15 = vmul.f32 %v1538_v13, %v1506_v45  ;;  %v1798_v13 = vld [vmem:[%s2839_s4 + $0x110] sm:$0xff]  ;;  %1818 = vmatpush.msrb.mxu2 %v1799_v12 }
 0xeec   :  { %v1543_v16 = vmul.f32 %v2098_v60, %v1540_v15  ;;  %1819 = vmatpush.msrb.mxu2 %v1798_v13  ;;  %v1797_v15 = vld [vmem:[%s2839_s4 + $0x108] sm:$0xff] }
 0xeee   :  { %v1546_v20 = vadd.f32 %v2099_v62, %v1543_v16  ;;  %v1796_v16 = vld [vmem:[%s2839_s4 + $0x100] sm:$0xff]  ;;  %1820 = vmatpush.msrb.mxu2 %v1797_v15 }
 0xef0   :  { %2044 = vmatmul.msk.f32.gmra.mxu2 %vm72_vm2, %v1546_v20 }
 0xef1   :  { %1821 = vmatpush.msrb.mxu2 %v1796_v16 }
 0xf38   :  { %v1576_v58 = vpop.f32.mrf.mxu2 }
 0xf39   :  { %v1577_v27 = vadd.f32 %v2100_v26, %v1576_v58 }
 0xf3b   :  { %v1582_v28 = vmax.f32 %v1577_v27, 0.0 }
 0xf3d   :  { %2045 = vmatmul.msk.f32.vlgmr.msra.gmra.mxu3 %vm72_vm2, %v1582_v28 }
 0xf73   :  { %v1579_v29 = vpop.f32.mrf.mxu2 }
 0xf74   :  { %v1580_v17 = vadd.f32 %v2100_v26, %v1579_v29 }
 0xf76   :  { %v1583_v30 = vmax.f32 %v1580_v17, 0.0 }
 0xf78   :  { %2046 = vmatmul.msk.f32.gmra.mxu3 %vm72_vm2, %v1583_v30 }
 0xfc0   :  { %v1613_v32 = vpop.f32.mrf.mxu3 }
 0xfc1   :  { %v1614_v33 = vadd.f32 %v2101_v31, %v1613_v32 }
 0xfc3   :  { %v1619_v34 = vadd.f32 %v1614_v33, %v1545_v0  ;;  %v1674_v0 = vshrl.u32 %v1673_v61, 7 }
 0xfc5   :  { %v1623_v35 = vsel %vm72_vm2, %v1619_v34, 0.0  ;;  %v1680_v6 = vand.u32 7, %v1674_v0  ;;  %v1675_v17 = vadd.s32 8, %v1674_v0 }
 0xfc6   :  { %1624 = vadd.xlane.f32.xlu0 %v1623_v35 }
 0xfc7   :  { %vm1700_vm14 = vcmp.eq.s32.totalorder %v1680_v6, 0  ;;  %v1687_v33 = vand.u32 7, %v1675_v17  ;;  %vm1717_vm4 = vcmp.eq.s32.totalorder %v1680_v6, 7 }
 0xfc9   :  { %vm1701_vm3 = vcmp.eq.s32.totalorder %v1687_v33, 0  ;;  %vm1718_vm5 = vcmp.eq.s32.totalorder %v1687_v33, 7 }
 0xffb   :  { %v1616_v36 = vpop.f32.mrf.mxu3 }
 0xffc   :  { %v1617_v37 = vadd.f32 %v2101_v31, %v1616_v36 }
 0xffe   :  { %v1620_v38 = vadd.f32 %v1617_v37, %v1546_v20 }
0x1000   :  { %v1626_v39 = vsel %vm72_vm2, %v1620_v38, 0.0 }
0x1001   :  { %1627 = vadd.xlane.f32.xlu1 %v1626_v39 }
0x1039   :  { %v1625_v11 = vpop.xlane.xlu0 %1624 }
0x103a   :  { %v1629_v42 = vmul.f32 %v1625_v11, %v2445_v40 }
0x103c   :  { %v1631_v24 = vsub.f32 %v1619_v34, %v1629_v42 }
0x103e   :  { %v1633_v43 = vmul.f32 %v1631_v24, %v1631_v24 }
0x1040   :  { %v1635_v41 = vsel %vm72_vm2, %v1633_v43, 0.0  ;;  %v1838_v43 = vld [vmem:[%s2839_s4 + $0x138] sm:$0xff] }
0x1041   :  { %1636 = vadd.xlane.f32.xlu0 %v1635_v41  ;;  %1859 = vmatpush.msrb.mxu3 %v1838_v43  ;;  %v1837_v41 = vld [vmem:[%s2839_s4 + $0x130] sm:$0xff] }
0x1043   :  { %1860 = vmatpush.msrb.mxu3 %v1837_v41 }
0x1074   :  { %v1628_v14 = vpop.xlane.xlu1 %1627 }
0x1075   :  { %v1630_v44 = vmul.f32 %v1628_v14, %v2445_v40  ;;  %v1836_v14 = vld [vmem:[%s2839_s4 + $0x128] sm:$0xff] }
0x1076   :  { %1861 = vmatpush.msrb.mxu3 %v1836_v14 }
0x1077   :  { %v2720_v5 = vsub.f32 %v1620_v38, %v1630_v44  ;;  %v1835_v44 = vld [vmem:[%s2839_s4 + $0x120] sm:$0xff] }
0x1078   :  { %1862 = vmatpush.msrb.mxu3 %v1835_v44 }
0x1079   :  { %v1634_v45 = vmul.f32 %v2720_v5, %v2720_v5 }
0x107b   :  { %v1638_v46 = vsel %vm72_vm2, %v1634_v45, 0.0 }
0x107c   :  { %1639 = vadd.xlane.f32.xlu2 %v1638_v46 }
0x10b4   :  { %v1637_v47 = vpop.xlane.xlu0 %1636 }
0x10b5   :  { %v1641_v55 = vmul.f32 %v1637_v47, %v2445_v40 }
0x10b7   :  { %v1643_v56 = vadd.f32 1e-05, %v1641_v55 }
0x10b9   :  { %2185 = vrsqrt.f32 %v1643_v56  ;;  %vm1651_vm11 = vweird.f32 %v1643_v56 }
0x10bf   :  { %v2186_v49 = vpop.eup %2185 }
0x10c0   :  { %v1646_v57 = vmul.f32 %v2186_v49, %v1643_v56  ;;  %vm1652_vm10 = vweird.f32 %v2186_v49  ;;  %v2105_v56 = vld [vmem:[%s2840_s5 + $0x12] ss:$0 sm:$0xff] }
0x10c1   :  { %vm1653_vm12 = vmor %vm1651_vm11, %vm1652_vm10 }
0x10c2   :  { %v1647_v59 = vmul.f32 %v2186_v49, %v1646_v57 }
0x10c4   :  { %v1648_v60 = vmul.f32 0.5, %v1647_v59 }
0x10c6   :  { %v1649_v19 = vsub.f32 1.5, %v1648_v60 }
0x10c8   :  { %v1650_v62 = vmul.f32 %v2186_v49, %v1649_v19 }
0x10ca   :  { %v1654_v1 = vsel %vm1653_vm12, %v2186_v49, %v1650_v62 }
0x10cb   :  { %v1665_v2 = vmul.f32 %v1654_v1, %v1631_v24 }
0x10cd   :  { %v1668_v4 = vmul.f32 %v2102_v63, %v1665_v2 }
0x10cf   :  { %v2756_v7 = vadd.f32 %v2103_v3, %v1668_v4 }
0x10d1   :  { %2047 = vmatmul.msk.f32.vlgmr.msrb.gmra.mxu1 %vm72_vm2, %v2756_v7  ;;  %v1705_v8 = vrot.slane %v2756_v7, 7 }
0x10d3   :  { %v1710_v9 = vsel %vm1704_vm13, 0.0, %v1705_v8 }
0x10d4   :  { %v1715_v10 = vsel %vm1700_vm14, 0.0, %v1710_v9 }
0x10d5   :  { %2049 = vmatmul.msk.f32.vlgmr.msra.gmra.mxu0 %vm72_vm2, %v1715_v10 }
0x10ef   :  { %v1640_v20 = vpop.xlane.xlu2 %1639 }
0x10f0   :  { %v1642_v21 = vmul.f32 %v1640_v20, %v2445_v40  ;;  %v1720_v40 = vrot.slane %v2756_v7, 1 }
0x10f2   :  { %v1644_v23 = vadd.f32 1e-05, %v1642_v21 }
0x10f4   :  { %2187 = vrsqrt.f32 %v1644_v23  ;;  %vm1661_vm0 = vweird.f32 %v1644_v23 }
0x10fa   :  { %v2188_v25 = vpop.eup %2187 }
0x10fb   :  { %v1656_v26 = vmul.f32 %v2188_v25, %v1644_v23  ;;  %vm1662_vm15 = vweird.f32 %v2188_v25 }
0x10fc   :  { %vm1663_vm1 = vmor %vm1661_vm0, %vm1662_vm15 }
0x10fd   :  { %v1657_v58 = vmul.f32 %v2188_v25, %v1656_v26 }
0x10ff   :  { %v1658_v27 = vmul.f32 0.5, %v1657_v58  ;;  %v1929_v58 = vld [vmem:[%s2839_s4 + $0x158] sm:$0xff] }
0x1100   :  { %1950 = vmatpush.msra.mxu1 %v1929_v58 }
0x1101   :  { %v1659_v28 = vsub.f32 1.5, %v1658_v27  ;;  %v1928_v27 = vld [vmem:[%s2839_s4 + $0x150] sm:$0xff] }
0x1102   :  { %1951 = vmatpush.msra.mxu1 %v1928_v27 }
0x1103   :  { %v1660_v29 = vmul.f32 %v2188_v25, %v1659_v28 }
0x1105   :  { %v1664_v30 = vsel %vm1663_vm1, %v2188_v25, %v1660_v29  ;;  %v1927_v29 = vld [vmem:[%s2839_s4 + $0x148] sm:$0xff] }
0x1106   :  { %v1666_v31 = vmul.f32 %v1664_v30, %v2720_v5  ;;  %1952 = vmatpush.msra.mxu1 %v1927_v29 }
0x1108   :  { %v1669_v32 = vmul.f32 %v2102_v63, %v1666_v31  ;;  %v1926_v31 = vld [vmem:[%s2839_s4 + $0x140] sm:$0xff] }
0x1109   :  { %1953 = vmatpush.msra.mxu1 %v1926_v31 }
0x110a   :  { %v2777_v34 = vadd.f32 %v2103_v3, %v1669_v32 }
0x110c   :  { %2048 = vmatmul.msk.f32.gmra.mxu1 %vm72_vm2, %v2777_v34  ;;  %v1706_v35 = vrot.slane %v2777_v34, 7  ;;  %v1721_v36 = vrot.slane %v2777_v34, 1 }
0x110e   :  { %v1707_v37 = vsel %vm1704_vm13, %v1705_v8, %v1706_v35  ;;  %v1722_v38 = vsel %vm1719_vm6, %v1720_v40, %v1721_v36  ;;  %v1725_v42 = vsel %vm1719_vm6, %v1721_v36, 0.0 }
0x110f   :  { %v1716_v39 = vsel %vm1701_vm3, 0.0, %v1707_v37  ;;  %v1730_v11 = vsel %vm1717_vm4, 0.0, %v1722_v38  ;;  %v1731_v24 = vsel %vm1718_vm5, 0.0, %v1725_v42 }
0x1110   :  { %2050 = vmatmul.msk.f32.gmra.mxu0 %vm72_vm2, %v1716_v39  ;;  %2051 = vmatmul.msk.f32.vlgmr.msrb.gmra.mxu2 %vm72_vm2, %v1730_v11 }
0x1118   :  { %2052 = vmatmul.msk.f32.gmra.mxu2 %vm72_vm2, %v1731_v24 }
0x114e   :  { %v1761_v45 = vpop.f32.mrf.mxu1 }
0x1152   :  { %v1790_v5 = vpop.f32.mrf.mxu0 }
0x1153   :  { %v1791_v46 = vadd.f32 %v1790_v5, %v1761_v45 }
0x1189   :  { %v1764_v53 = vpop.f32.mrf.mxu1 }
0x118d   :  { %v1793_v52 = vpop.f32.mrf.mxu0 }
0x118e   :  { %v1794_v54 = vadd.f32 %v1793_v52, %v1764_v53 }
0x1193   :  { %v1823_v18 = vpop.f32.mrf.mxu2 }
0x1194   :  { %v1829_v50 = vadd.f32 %v1823_v18, %v1791_v46 }
0x1196   :  { %v1833_v51 = vadd.f32 %v2104_v48, %v1829_v50 }
0x1198   :  { %2053 = vmatmul.msk.f32.vlgmr.msrb.gmra.mxu3 %vm72_vm2, %v1833_v51 }
0x119b   :  { %v1826_v22 = vpop.f32.mrf.mxu2 }
0x119c   :  { %v1830_v47 = vadd.f32 %v1826_v22, %v1794_v54 }
0x119e   :  { %v1834_v55 = vadd.f32 %v2104_v48, %v1830_v47 }
0x11a0   :  { %2054 = vmatmul.msk.f32.gmra.mxu3 %vm72_vm2, %v1834_v55 }
0x121b   :  { %v1864_v49 = vpop.f32.mrf.mxu3 }
0x121c   :  { %v1865_v57 = vadd.f32 %v2105_v56, %v1864_v49 }
0x121e   :  { %v1870_v59 = vsel %vm72_vm2, %v1865_v57, -inf }
0x121f   :  { %v1871_v60 = vrot.slane %v1870_v59, 4 }
0x1221   :  { %v1872_v61 = vmax.f32 %v1870_v59, %v1871_v60 }
0x1223   :  { %v1873_v19 = vrot.slane %v1872_v61, 2  ;;  %v1867_v62 = vpop.f32.mrf.mxu3 }
0x1224   :  { %v1868_v63 = vadd.f32 %v2105_v56, %v1867_v62 }
0x1225   :  { %v1874_v0 = vmax.f32 %v1872_v61, %v1873_v19 }
0x1226   :  { %v1877_v1 = vsel %vm72_vm2, %v1868_v63, -inf }
0x1227   :  { %v1875_v2 = vrot.slane %v1874_v0, 1  ;;  %v1878_v3 = vrot.slane %v1877_v1, 4 }
0x1229   :  { %v1876_v4 = vmax.f32 %v1874_v0, %v1875_v2  ;;  %v1879_v6 = vmax.f32 %v1877_v1, %v1878_v3 }
0x122b   :  { %v1884_v8 = vsub.f32 %v1865_v57, %v1876_v4  ;;  %v1880_v9 = vrot.slane %v1879_v6, 2 }
0x122d   :  { %v1886_v10 = vmul.f32 1.442695, %v1884_v8  ;;  %v1881_v12 = vmax.f32 %v1879_v6, %v1880_v9 }
0x122f   :  { %2189 = vpow2.f32 %v1886_v10  ;;  %v1882_v13 = vrot.slane %v1881_v12, 1 }
0x1231   :  { %v1883_v15 = vmax.f32 %v1881_v12, %v1882_v13 }
0x1233   :  { %v1885_v16 = vsub.f32 %v1868_v63, %v1883_v15 }
0x1235   :  { %v2190_v20 = vpop.eup %2189  ;;  %v1888_v21 = vmul.f32 1.442695, %v1885_v16 }
0x1236   :  { %v1890_v23 = vsel %vm72_vm2, %v2190_v20, 0.0 }
0x1237   :  { %v1891_v25 = vrot.slane %v1890_v23, 4  ;;  %2191 = vpow2.f32 %v1888_v21 }
0x1239   :  { %v1892_v26 = vadd.f32 %v1891_v25, %v1890_v23 }
0x123b   :  { %v1893_v28 = vrot.slane %v1892_v26, 2 }
0x123d   :  { %v2192_v17 = vpop.eup %2191  ;;  %v1894_v30 = vadd.f32 %v1893_v28, %v1892_v26 }
0x123e   :  { %v1897_v32 = vsel %vm72_vm2, %v2192_v17, 0.0 }
0x123f   :  { %v1895_v33 = vrot.slane %v1894_v30, 1  ;;  %v1898_v40 = vrot.slane %v1897_v32, 4 }
0x1241   :  { %v1896_v35 = vadd.f32 %v1895_v33, %v1894_v30  ;;  %v1899_v36 = vadd.f32 %v1898_v40, %v1897_v32 }
0x1243   :  { %2193 = vrcp.f32 %v1896_v35  ;;  %v1900_v37 = vrot.slane %v1899_v36, 2 }
0x1245   :  { %v1901_v38 = vadd.f32 %v1900_v37, %v1899_v36 }
0x1247   :  { %v1902_v39 = vrot.slane %v1901_v38, 1 }
0x1249   :  { %v2194_v11 = vpop.eup %2193  ;;  %v1903_v42 = vadd.f32 %v1902_v39, %v1901_v38 }
0x124a   :  { %v1906_v24 = vmul.f32 %v2194_v11, %v2190_v20 }
0x124b   :  { %2195 = vrcp.f32 %v1903_v42 }
0x124c   :  { %v1908_v43 = vmul.f32 %v1906_v24, %v1833_v51 }
0x124e   :  { %v1910_v41 = vsel %vm72_vm2, %v1908_v43, 0.0 }
0x124f   :  { %v1911_v14 = vrot.slane %v1910_v41, 4 }
0x1251   :  { %v2196_v44 = vpop.eup %2195  ;;  %v1912_v5 = vadd.f32 %v1911_v14, %v1910_v41 }
0x1252   :  { %v1907_v45 = vmul.f32 %v2196_v44, %v2192_v17 }
0x1253   :  { %v1913_v46 = vrot.slane %v1912_v5, 2 }
0x1254   :  { %v1909_v48 = vmul.f32 %v1907_v45, %v1834_v55  ;;  %v2106_v55 = vld [vmem:[%s2840_s5 + $0x13] ss:$0 sm:$0xff] }
0x1255   :  { %v1914_v18 = vadd.f32 %v1913_v46, %v1912_v5 }
0x1256   :  { %v1917_v50 = vsel %vm72_vm2, %v1909_v48, 0.0 }
0x1257   :  { %v1918_v52 = vrot.slane %v1917_v50, 4  ;;  %v1915_v54 = vrot.slane %v1914_v18, 1 }
0x1259   :  { %v1919_v53 = vadd.f32 %v1918_v52, %v1917_v50  ;;  %v1916_v47 = vadd.f32 %v1915_v54, %v1914_v18 }
0x125b   :  { %v1920_v22 = vrot.slane %v1919_v53, 2  ;;  %v1924_v51 = vadd.f32 %v1916_v47, %v2756_v7 }
0x125d   :  { %v1921_v56 = vadd.f32 %v1920_v22, %v1919_v53  ;;  %v1932_v60 = vrot.slane %v1924_v51, 7 }
0x125f   :  { %v1922_v49 = vrot.slane %v1921_v56, 1 }
0x1261   :  { %v1923_v57 = vadd.f32 %v1922_v49, %v1921_v56 }
0x1263   :  { %v1925_v59 = vadd.f32 %v1923_v57, %v2777_v34 }
0x1265   :  { %v1933_v61 = vrot.slane %v1925_v59, 6 }
0x1267   :  { %v1935_v19 = vsel %vm1934_vm7, %v1933_v61, %v1932_v60 }
0x1268   :  { %2055 = vmatmul.msk.f32.vlgmr.msra.gmra.mxu1 %vm72_vm2, %v1935_v19 }
0x12e5   :  { %v1955_v62 = vpop.f32.mrf.mxu1 }
0x12e6   :  { %v1960_v7 = vadd.f32 %v2106_v55, %v1955_v62 }
0x12e8   :  { %v1961_v34 = vmul.f32 100.0, %v1960_v7 }
0x12ea   :  { %1963 = vst.msk [vmem:[#allocation2] sm:$0x3] %vm1962_vm8, %v1961_v34 }
0x12eb   :  { %1974 = dma.vmem_to_hbm [thread:$0]  %s1970_s1, 32, %s1972_s17, [#allocation3]  }
0x12ec   :  { %2221 = dma.done.wait [#allocation3], 32  }
0x12ed   :  { %2222 = vsyncadd [#allocation3], 4294967264 }
0x12ee   :  { %1979 = vsyncpa [#allocation3], 1 }

</bundles_post_ra>
